<compile_context>
chip_gen: v7x
topology: tpu7x:2x2x1
jax: 0.10.0
libtpu: 0.0.40
codegen_flags: <defaults>
</compile_context>

<pallas_src>
import functools

import jax
import jax.numpy as jnp
from jax.experimental import pallas as pl
from jax.experimental.pallas import tpu as pltpu


def _gfft_kernel(x_ref, b_ref, o_ref, *, mapping_dim):
    # x_ref: (tm, C), b_ref: (C, M) already scaled by 2*pi, o_ref: (tm, 2*M)
    proj = jnp.dot(
        x_ref[...],
        b_ref[...],
        preferred_element_type=jnp.float32,
        precision=jax.lax.Precision.HIGHEST,
    )
    o_ref[:, :mapping_dim] = jnp.sin(proj).astype(o_ref.dtype)
    o_ref[:, mapping_dim:] = jnp.cos(proj).astype(o_ref.dtype)


def gaussian_fourier_feature_transform(x, B, *, tm=1024, out_dtype=jnp.float32):
    """x: [b, n, c] (or [n, c]), B: [c, M].  Returns [b, n, 2*M] in out_dtype."""
    if x.ndim == 2:
        x = x[None]
    b, n, c = x.shape
    cB, M = B.shape
    assert c == cB, "channel mismatch between x and B"
    rows = b * n

    # Fold the 2*pi factor into B once (B is reused by every grid step).
    B_scaled = (2.0 * jnp.pi) * B.astype(jnp.float32)

    # Lane-dense output: pad M up to a multiple of 128 so both halves of the
    # output tile are unmasked vector stores.
    M_pad = ((M + 127) // 128) * 128
    if M_pad != M:
        B_scaled = jnp.pad(B_scaled, ((0, 0), (0, M_pad - M)))

    x_flat = x.reshape(rows, c).astype(jnp.float32)

    # Row-tile selection: big tiles amortize the ~0.35us per-step pipeline
    # overhead; clamp to the problem size (cdiv grid masks a partial last block).
    tm_eff = min(tm, rows)
    if tm_eff < rows:
        tm_eff = max(8, (tm_eff // 8) * 8)  # sublane alignment for non-full blocks
    # Megacore (v7x has 2 TensorCores): keep >= 2 grid steps when there is
    # enough work, so the "parallel" grid axis can be sharded across cores.
    if pl.cdiv(rows, tm_eff) < 2 and rows >= 16:
        tm_eff = max(8, (((rows + 1) // 2 + 7) // 8) * 8)
    grid = (pl.cdiv(rows, tm_eff),)

    itemsize = jnp.dtype(out_dtype).itemsize
    cost = pl.CostEstimate(
        flops=2 * rows * c * M_pad,
        transcendentals=2 * rows * M_pad,
        bytes_accessed=rows * c * 4 + c * M_pad * 4 + rows * 2 * M_pad * itemsize,
    )

    kernel = functools.partial(_gfft_kernel, mapping_dim=M_pad)

    out_flat = pl.pallas_call(
        kernel,
        out_shape=jax.ShapeDtypeStruct((rows, 2 * M_pad), out_dtype),
        grid_spec=pltpu.PrefetchScalarGridSpec(
            num_scalar_prefetch=0,
            grid=grid,
            in_specs=[
                pl.BlockSpec((tm_eff, c), lambda i: (i, 0)),     # X row tile
                pl.BlockSpec((c, M_pad), lambda i: (0, 0)),      # full (scaled) B, resident
            ],
            out_specs=pl.BlockSpec((tm_eff, 2 * M_pad), lambda i: (i, 0)),
        ),
        compiler_params=pltpu.CompilerParams(
            dimension_semantics=("parallel",)),
        cost_estimate=cost,
    )(x_flat, B_scaled)

    if M_pad != M:
        out_flat = jnp.concatenate(
            [out_flat[:, :M], out_flat[:, M_pad:M_pad + M]], axis=-1)

    return out_flat.reshape(b, n, 2 * M)


def _reference(x, B):
    proj = 2.0 * jnp.pi * jnp.einsum(
        "bnc,cm->bnm", x, B, precision=jax.lax.Precision.HIGHEST)
    return jnp.concatenate([jnp.sin(proj), jnp.cos(proj)], axis=-1)


if __name__ == "__main__":
    # Module config (small, consistent with the forward pass):
    num_input_channels = 4
    mapping_size = 128
    num_heads = 1
    scale = 10.0

    batches, num_points = 2, 64          # b*n = 128 rows

    key = jax.random.PRNGKey(0)
    kx, kb = jax.random.split(key)
    x = jax.random.normal(kx, (batches, num_points, num_input_channels),
                          dtype=jnp.float32)
    # Deterministic parameter init, matching torch.randn(c, M*H) * scale
    B = jax.random.normal(kb, (num_input_channels, mapping_size * num_heads),
                          dtype=jnp.float32) * scale

    out = gaussian_fourier_feature_transform(x, B)
    out = jax.block_until_ready(out)

    ref = _reference(x, B)
    assert out.shape == (batches, num_points, 2 * mapping_size * num_heads)
    assert jnp.allclose(out, ref, atol=2e-3, rtol=2e-3), "mismatch vs reference"

    # TODO(synk): unfold_head=True path ('b n (h d) -> b h n d') is a pure
    # reshape/transpose and would live in the wrapper, omitted here.
    print("KERNEL_OK")
</pallas_src>

<mosaic_0001>
module attributes {stable_mosaic.version = 11 : i64} {
  func.func @_gfft_kernel(%arg0: i32, %arg1: memref<64x4xf32, #tpu.memory_space<vmem>>, %arg2: memref<4x128xf32, #tpu.memory_space<vmem>>, %arg3: memref<64x256xf32, #tpu.memory_space<vmem>>) attributes {dimension_semantics = [#tpu.dimension_semantics<parallel>], iteration_bounds = array<i64: 2>, scalar_prefetch = 0 : i64, scratch_operands = 0 : i64, tpu.core_type = #tpu.core_type<tc>, window_params = [{transform_indices = @transform_0, window_bounds = array<i64: 64, 4>}, {pipeline_mode = #tpu.pipeline_mode<synchronous>, transform_indices = @transform_1, window_bounds = array<i64: 4, 128>}, {transform_indices = @transform_2, window_bounds = array<i64: 64, 256>}]} {
    %c0 = arith.constant 0 : index
    %c0_0 = arith.constant 0 : index
    %0 = vector.load %arg1[%c0, %c0_0] : memref<64x4xf32, #tpu.memory_space<vmem>>, vector<64x4xf32>
    %c0_1 = arith.constant 0 : index
    %c0_2 = arith.constant 0 : index
    %1 = vector.load %arg2[%c0_1, %c0_2] : memref<4x128xf32, #tpu.memory_space<vmem>>, vector<4x128xf32>
    %cst = arith.constant dense<0.000000e+00> : vector<64x128xf32>
    %2 = tpu.matmul %0, %1, %cst {dimension_numbers = #tpu.dot_dimension_numbers<[1], [0], [0], [1], [0, 0, 1, 1], [], []>, precision = #tpu.contract_precision<fp32>} : vector<64x4xf32>, vector<4x128xf32>, vector<64x128xf32> -> vector<64x128xf32>
    %3 = math.sin %2 : vector<64x128xf32>
    %c0_3 = arith.constant 0 : index
    %c0_4 = arith.constant 0 : index
    %4 = vector.load %arg3[%c0_3, %c0_4] : memref<64x256xf32, #tpu.memory_space<vmem>>, vector<64x128xf32>
    tpu.vector_store %arg3[%c0_3, %c0_4], %3 {strides = array<i32>} : memref<64x256xf32, #tpu.memory_space<vmem>>, vector<64x128xf32>,
    %5 = math.cos %2 : vector<64x128xf32>
    %c0_5 = arith.constant 0 : index
    %c128 = arith.constant 128 : index
    %6 = vector.load %arg3[%c0_5, %c128] : memref<64x256xf32, #tpu.memory_space<vmem>>, vector<64x128xf32>
    tpu.vector_store %arg3[%c0_5, %c128], %5 {strides = array<i32>} : memref<64x256xf32, #tpu.memory_space<vmem>>, vector<64x128xf32>,
    return
  }
  func.func @transform_0(%arg0: i32) -> (i32, i32) {
    %c0_i32 = arith.constant 0 : i32
    %c0_i32_0 = arith.constant 0 : i32
    return %arg0, %c0_i32 : i32, i32
  }
  func.func @transform_1(%arg0: i32) -> (i32, i32) {
    %c0_i32 = arith.constant 0 : i32
    %c0_i32_0 = arith.constant 0 : i32
    %c0_i32_1 = arith.constant 0 : i32
    return %c0_i32, %c0_i32_0 : i32, i32
  }
  func.func @transform_2(%arg0: i32) -> (i32, i32) {
    %c0_i32 = arith.constant 0 : i32
    %c0_i32_0 = arith.constant 0 : i32
    return %arg0, %c0_i32 : i32, i32
  }
}

</mosaic_0001>

<bundles_post_ra>
// kernel: tpu_custom_call.1
= control target key start
LH: loop header
LB: loop body
LE: loop exit
PB: predicated region body
PF: predicated region fallthrough
CT: control target
= control target key end

     0   :  { %7 = vsyncpa [#allocation3], 0  ;;  %s4118_s0 = inlined_call_operand.vmem [shape: f32[128,4], index: 0, kind: input, shape index: {}]   ;;  %s4119_s1 = inlined_call_operand.vmem [shape: f32[4,128], index: 1, kind: input, shape index: {}]   ;;  %s4120_s2 = inlined_call_operand.hbm [shape: f32[128,256], index: 2, kind: output, shape index: {}]  }
   0x1   :  { %9 = vsyncpa [#allocation3 + $0x1], 0  ;;  %s3135_s9 = smov 0   ;;  %s3137_s10 = smov 0  }
   0x2   :  { %s3139_s11 = smov 0   ;;  %s3141_s12 = smov 0  }
   0x3 LB: > { %s3156_s13 = sadd.s32 4294967295, %s3109_s12   ;;  %s2679_s14 = sadd.s32 4294967294, %s3109_s12   ;;  %s3109_s12 = sphi %s3141_s12, %s4138_s12   ;;  %s3105_s11 = sphi %s3139_s11, %s4137_s11   ;;  %s3101_s10 = sphi %s3137_s10, %s4136_s10   ;;  %s3097_s9 = sphi %s3135_s9, %s4135_s9  }
   0x4   : > { %s3160_s15 = sadd.s32 1, %s3109_s12   ;;  %s69_s16 = sadd.s32 1, %s3105_s11 }
   0x5   : > { %s66_s17 = ssub.s32 %s3109_s12, %s3160_s15  ;;  %p79_p0 = scmp.ne.s32.totalorder %s3105_s11, %s3101_s10 }
   0x6   : > { %p67_p1 = scmp.eq.s32.totalorder %s66_s17, 0  ;;  %p80_p2 = scmp.eq.s32.totalorder %s3156_s13, 1 }
   0x7   : > { %p85_p3 = scmp.ne.s32.totalorder %s3101_s10, %s3097_s9  ;;  %p86_p4 = scmp.eq.s32.totalorder %s2679_s14, 1 }
   0x8   : > { %s3171_s18 = scalar_select %p67_p1, %s3105_s11, %s69_s16  }
   0x9   : > { %p3173_p5 = por %p80_p2, %p79_p0  ;;  %p3177_p6 = por %p86_p4, %p85_p3 }
   0xa   : > { %p2682_p7 = scmp.ge.s32.totalorder %s3109_s12, 1  ;;  %p116_p8 = scmp.lt.s32.totalorder %s3109_s12, 3 }
   0xc   : > { %p117_p9 = pnand %p2682_p7, %p116_p8 }
   0xd   : > { %v153_v0 = vld [vmem:[%s4119_s1] sm:$0xf] (!%p117_p9)  ;;  %vm179_vm0 = vcmask (!%p117_p9), 1043456   ;;  %s2684_s23 = sshll.u32 (!%p117_p9), %s3156_s13, 3  ;;  %vm154_vm1 = vcmask (!%p117_p9), 31744   ;;  %s135_s28 = sand.u32 (!%p117_p9), 1, %s3101_s10  }
   0xe   : > { %120 = sbr.rel (%p117_p9) target bundleno = 545 (0x221), region = 28  ;;  %v181_v1 = vsel (!%p117_p9), %vm179_vm0, %v153_v0, 0  ;;  %p139_p10 = scmp.lt.s32.totalorder (!%p117_p9), %s2684_s23, 15 }
   0xf   : > { %v3187_v2 = vand.u32 (!%p117_p9), 4294901760, %v181_v1  ;;  %s3568_s29 = sshll.u32 (!%p117_p9), %s135_s28, 7  ;;  %s2757_s3 = sshll.u32 (!%p117_p9), %s3156_s13, 11 }
  0x10   : > { %s3612_s30 = scalar_lea.vmem (!%p117_p9), [#allocation2], %s3568_s29  ;;  %s4068_s7 = scalar_lea.hbm (!%p117_p9), %s4120_s2, %s2757_s3 }
  0x11   : > { %2854 = vmatprep.subr.mxu0 (!%p117_p9), %v3187_v2  ;;  %2812 = vmatprep.subr.mxu1 (!%p117_p9), %v3187_v2  ;;  %v3192_v3 = vsub.f32 (!%p117_p9), %v181_v1, %v3187_v2  ;;  %s2617_s4 = sshll.u32 (!%p117_p9), %s3612_s30, 4  ;;  %s4077_s8 = scalar_lea.sflag (!%p117_p9), [#allocation3], %s135_s28  ;;  %s4070_s4 = int_to_ptr.vmem [resolvable:$true] %s2617_s4 }
  0x12   : > { %2855 = vmatpush3.msra.mxu0 (!%p117_p9), %v3187_v2  ;;  %2813 = vmatpush3.msra.mxu1 (!%p117_p9), %v3187_v2  ;;  %s3047_s13 = scalar_lea.vmem (!%p117_p9), %s4070_s4, 2048  ;;  %s3117_s14 = smov (!%p117_p9), [#allocation2]  }
  0x13   : > { %v332_v4 = vand.u32 (!%p117_p9), 4294901760, %v3192_v3  ;;  %p3048_p11 = scmp.ne.s32.totalorder (!%p117_p9), %s4070_s4, %s3047_s13  ;;  %s3051_s16 = sshll.u32 (!%p117_p9), %s3117_s14, 4  ;;  %s3052_s16 = int_to_ptr.vmem [resolvable:$false] %s3051_s16 }
  0x14   : > { %s3053_s17 = scalar_lea.vmem (!%p117_p9), %s3052_s16, 4096  ;;  %p3054_p0 = scmp.lt.s32.totalorder (!%p117_p9), %s4070_s4, %s3052_s16 }
  0x15   : > { %s4140_s23 = smov (!%p139_p10, %s2684_s23), 15  ;;  %v333_v10 = vsub.f32 %v3192_v3, %v332_v4  ;;  %2868 = vmatprep.subr.mxu0 %v332_v4  ;;  %p3049_p12 = pnand %p3048_p11, %p3173_p5 }
  0x16   : > { %s2685_s24 = sshll.u32 %s4140_s23, 3  ;;  %p3055_p1 = scmp.lt.s32.totalorder %s3053_s17, %s3047_s13 }
  0x17   : > { %s142_s27 = scalar_lea.vmem %s4118_s0, %s2685_s24  ;;  %v334_v21 = vand.u32 4294901760, %v333_v10  ;;  %p3050_p13 = pneg %p3049_p12 }
  0x18   : > { %v145_v5 = vld [vmem:[%s142_s27] sm:$0xff]  ;;  %v146_v6 = vld [vmem:[%s142_s27 + $0x8] sm:$0xff]  ;;  %v147_v7 = vld [vmem:[%s142_s27 + $0x10] sm:$0xff]  ;;  %p3056_p2 = por %p3055_p1, %p3054_p0 }
  0x19   : > { %v156_v8 = vsel %vm154_vm1, %v145_v5, 0  ;;  %v159_v9 = vsel %vm154_vm1, %v146_v6, 0  ;;  %v162_v11 = vsel %vm154_vm1, %v147_v7, 0  ;;  %v148_v12 = vld [vmem:[%s142_s27 + $0x18] sm:$0xff]  ;;  %v149_v13 = vld [vmem:[%s142_s27 + $0x20] sm:$0xff]  ;;  %v150_v14 = vld [vmem:[%s142_s27 + $0x28] sm:$0xff]  ;;  %2826 = vmatprep.subr.mxu1 %v334_v21 }
  0x1a   : > { %v3204_v15 = vand.u32 4294901760, %v156_v8  ;;  %v3206_v16 = vand.u32 4294901760, %v159_v9  ;;  %v3208_v17 = vand.u32 4294901760, %v162_v11  ;;  %v165_v18 = vsel %vm154_vm1, %v148_v12, 0  ;;  %v151_v19 = vld [vmem:[%s142_s27 + $0x30] sm:$0xff]  ;;  %v152_v20 = vld [vmem:[%s142_s27 + $0x38] sm:$0xff]  ;;  %p3057_p3 = pnand %p3056_p2, %p3050_p13 }
  0x1b   : > { %v3211_v22 = vand.u32 4294901760, %v165_v18  ;;  %v168_v23 = vsel %vm154_vm1, %v149_v13, 0  ;;  %v171_v24 = vsel %vm154_vm1, %v150_v14, 0  ;;  %v174_v31 = vsel %vm154_vm1, %v151_v19, 0 }
  0x1c   : > { %v3216_v25 = vsub.f32 %v156_v8, %v3204_v15  ;;  %v3219_v26 = vsub.f32 %v159_v9, %v3206_v16  ;;  %v3222_v27 = vsub.f32 %v162_v11, %v3208_v17  ;;  %v3224_v28 = vand.u32 4294901760, %v168_v23 }
  0x1d   : > { %v3227_v29 = vsub.f32 %v165_v18, %v3211_v22  ;;  %v3229_v30 = vand.u32 4294901760, %v171_v24  ;;  %v177_v32 = vsel %vm154_vm1, %v152_v20, 0  ;;  %v3243_v39 = vand.u32 4294901760, %v174_v31 }
  0x1e   : > { %v251_v33 = vand.u32 4294901760, %v3216_v25  ;;  %v261_v34 = vand.u32 4294901760, %v3219_v26  ;;  %v271_v35 = vand.u32 4294901760, %v3222_v27  ;;  %v3237_v36 = vsub.f32 %v168_v23, %v3224_v28 }
  0x1f   : > { %v281_v37 = vand.u32 4294901760, %v3227_v29  ;;  %v3241_v38 = vsub.f32 %v171_v24, %v3229_v30  ;;  %v3245_v40 = vand.u32 4294901760, %v177_v32  ;;  %v3254_v47 = vsub.f32 %v174_v31, %v3243_v39 }
  0x20   : > { %2856 = vmatprep.mubr.f32.mxu0 %v251_v33  ;;  %v252_v41 = vsub.f32 %v3216_v25, %v251_v33  ;;  %v262_v42 = vsub.f32 %v3219_v26, %v261_v34  ;;  %v272_v43 = vsub.f32 %v3222_v27, %v271_v35  ;;  %v291_v44 = vand.u32 4294901760, %v3237_v36 }
  0x21   : > { %2857 = vmatmul.mubr.f32.vlgmr.msra.gmra.mrb[0].mxu0 %v261_v34  ;;  %v282_v45 = vsub.f32 %v3227_v29, %v281_v37  ;;  %v301_v46 = vand.u32 4294901760, %v3241_v38  ;;  %v3257_v48 = vsub.f32 %v177_v32, %v3245_v40  ;;  %v311_v53 = vand.u32 4294901760, %v3254_v47 }
  0x22   : > { %v253_v49 = vand.u32 4294901760, %v252_v41  ;;  %2859 = vmatprep.mubr.f32.mxu0 %v271_v35  ;;  %v263_v50 = vand.u32 4294901760, %v262_v42  ;;  %2869 = vmatpush3.msra.mxu0 %v332_v4  ;;  %v273_v51 = vand.u32 4294901760, %v272_v43  ;;  %v292_v52 = vsub.f32 %v3237_v36, %v291_v44 }
  0x23   : > { %2882 = vmatprep.subr.mxu0 %v3187_v2  ;;  %v283_v54 = vand.u32 4294901760, %v282_v45  ;;  %v302_v55 = vsub.f32 %v3241_v38, %v301_v46  ;;  %v321_v56 = vand.u32 4294901760, %v3257_v48  ;;  %v312_v58 = vsub.f32 %v3254_v47, %v311_v53 }
  0x24   : > { %2814 = vmatprep.mubr.f32.mxu1 %v253_v49  ;;  %v293_v57 = vand.u32 4294901760, %v292_v52  ;;  %v3114_v52 = vmov 2102212464  }
  0x25   : > { %2815 = vmatmul.mubr.f32.vlgmr.msra.gmra.mrb[0].mxu1 %v263_v50  ;;  %2860 = vmatmul.mubr.f32.gmra.mrb[2].mxu0 %v281_v37  ;;  %v303_v59 = vand.u32 4294901760, %v302_v55  ;;  %v322_v60 = vsub.f32 %v3257_v48, %v321_v56  ;;  %v313_v61 = vand.u32 4294901760, %v312_v58  ;;  %v3113_v50 = vmov 2131351028  }
  0x26   : > { %2827 = vmatpush3.msra.mxu1 %v334_v21  ;;  %2817 = vmatprep.mubr.f32.mxu1 %v273_v51 }
  0x27   : > { %2862 = vmatprep.mubr.f32.mxu0 %v291_v44  ;;  %2840 = vmatprep.subr.mxu1 %v3192_v3  ;;  %v323_v62 = vand.u32 4294901760, %v322_v60  ;;  %v3111_v44 = vmov 683565275  }
  0x29   : > { %2818 = vmatmul.mubr.f32.gmra.mrb[2].mxu1 %v283_v54  ;;  %2863 = vmatmul.mubr.f32.gmra.mrb[4].mxu0 %v301_v46  ;;  %v3115_v54 = vmov 920167782  }
  0x2a   : > { %2820 = vmatprep.mubr.f32.mxu1 %v293_v57  ;;  %2865 = vmatprep.mubr.f32.mxu0 %v311_v53 }
  0x2d   : > { %2821 = vmatmul.mubr.f32.gmra.mrb[4].mxu1 %v303_v59  ;;  %2866 = vmatmul.mubr.f32.gmra.mrb[6].mxu0 %v321_v56 }
  0x2e   : > { %2823 = vmatprep.mubr.f32.mxu1 %v313_v61  ;;  %2870 = vmatprep.mubr.f32.mxu0 %v3204_v15  ;;  %v3116_v61 = vmov 1326507024  }
  0x31   : > { %2824 = vmatmul.mubr.f32.gmra.mrb[6].mxu1 %v323_v62  ;;  %2871 = vmatmul.mubr.f32.vlgmr.msra.gmra.mrb[0].mxu0 %v3206_v16 }
  0x32   : > { %2828 = vmatprep.mubr.f32.mxu1 %v3204_v15  ;;  %2873 = vmatprep.mubr.f32.mxu0 %v3208_v17 }
  0x33   : > { %2883 = vmatpush3.msra.mxu0 %v3187_v2 }
  0x35   : > { %2829 = vmatmul.mubr.f32.vlgmr.msra.gmra.mrb[0].mxu1 %v3206_v16  ;;  %2874 = vmatmul.mubr.f32.gmra.mrb[2].mxu0 %v3211_v22 }
  0x36   : > { %2841 = vmatpush3.msra.mxu1 %v3192_v3  ;;  %2831 = vmatprep.mubr.f32.mxu1 %v3208_v17 }
  0x37   : > { %2876 = vmatprep.mubr.f32.mxu0 %v3224_v28 }
  0x39   : > { %2832 = vmatmul.mubr.f32.gmra.mrb[2].mxu1 %v3211_v22  ;;  %2877 = vmatmul.mubr.f32.gmra.mrb[4].mxu0 %v3229_v30 }
  0x3a   : > { %2834 = vmatprep.mubr.f32.mxu1 %v3224_v28  ;;  %2879 = vmatprep.mubr.f32.mxu0 %v3243_v39 }
  0x3d   : > { %2835 = vmatmul.mubr.f32.gmra.mrb[4].mxu1 %v3229_v30  ;;  %2880 = vmatmul.mubr.f32.gmra.mrb[6].mxu0 %v3245_v40 }
  0x3e   : > { %2837 = vmatprep.mubr.f32.mxu1 %v3243_v39  ;;  %2884 = vmatprep.mubr.f32.mxu0 %v3204_v15 }
  0x41   : > { %2838 = vmatmul.mubr.f32.gmra.mrb[6].mxu1 %v3245_v40  ;;  %2885 = vmatmul.mubr.f32.vlgmr.msra.gmra.mrb[0].mxu0 %v3206_v16 }
  0x42   : > { %2842 = vmatprep.mubr.f32.mxu1 %v3216_v25  ;;  %2887 = vmatprep.mubr.f32.mxu0 %v3208_v17 }
  0x45   : > { %2843 = vmatmul.mubr.f32.vlgmr.msra.gmra.mrb[0].mxu1 %v3219_v26  ;;  %2888 = vmatmul.mubr.f32.gmra.mrb[2].mxu0 %v3211_v22 }
  0x46   : > { %2845 = vmatprep.mubr.f32.mxu1 %v3222_v27  ;;  %2890 = vmatprep.mubr.f32.mxu0 %v3224_v28 }
  0x49   : > { %2846 = vmatmul.mubr.f32.gmra.mrb[2].mxu1 %v3227_v29  ;;  %2891 = vmatmul.mubr.f32.gmra.mrb[4].mxu0 %v3229_v30 }
  0x4a   : > { %2848 = vmatprep.mubr.f32.mxu1 %v3237_v36  ;;  %2893 = vmatprep.mubr.f32.mxu0 %v3243_v39 }
  0x4d   : > { %2849 = vmatmul.mubr.f32.gmra.mrb[4].mxu1 %v3241_v38  ;;  %2894 = vmatmul.mubr.f32.gmra.mrb[6].mxu0 %v3245_v40 }
  0x4e   : > { %2851 = vmatprep.mubr.f32.mxu1 %v3254_v47 }
  0x51   : > { %2852 = vmatmul.mubr.f32.gmra.mrb[6].mxu1 %v3257_v48  ;;  %v3112_v48 = vmov 2475754826  }
 0x114   : > { %v2886_v63 = vpop.f32.mrb[0].mxu0 }
 0x115   : > { %v884_v0 = vpop.f32.mrb[1].mxu0 }
 0x118   : > { %v2844_v1 = vpop.f32.mrb[0].mxu1  ;;  %v2889_v2 = vpop.f32.mrb[2].mxu0 }
 0x119   : > { %v3301_v3 = vadd.f32 %v2886_v63, %v2844_v1  ;;  %v517_v4 = vpop.f32.mrb[1].mxu1  ;;  %v896_v5 = vpop.f32.mrb[3].mxu0 }
 0x11a   : > { %v3303_v6 = vadd.f32 %v884_v0, %v517_v4 }
 0x11b   : > { %v1034_v7 = vand.u32 2147483647, %v3301_v3  ;;  %v1037_v8 = vand.u32 2139095040, %v3301_v3  ;;  %vm1036_vm0 = vcmp.lt.s32.totalorder %v3301_v3, 0 }
 0x11c   : > { %v930_v9 = vand.u32 2147483647, %v3303_v6  ;;  %v933_v10 = vand.u32 2139095040, %v3303_v6  ;;  %v2847_v11 = vpop.f32.mrb[2].mxu1  ;;  %v3309_v12 = vpop.f32.mrb[4].mxu0 }
 0x11d   : > { %v1038_v13 = vshrl.u32 %v1037_v8, 23  ;;  %v3311_v14 = vadd.f32 %v2889_v2, %v2847_v11  ;;  %v531_v15 = vpop.f32.mrb[3].mxu1  ;;  %v1041_v16 = vand.u32 8388607, %v1034_v7  ;;  %v3319_v20 = vpop.f32.mrb[5].mxu0 }
 0x11e   : > { %v934_v17 = vshrl.u32 %v933_v10, 23  ;;  %v937_v18 = vand.u32 8388607, %v930_v9  ;;  %v3317_v19 = vadd.f32 %v896_v5, %v531_v15  ;;  %vm3422_vm15 = vcmp.le.f32.partialorder %v1034_v7, 0.7853982 }
 0x11f   : > { %v2690_v21 = vadd.s32 4294967169, %v1038_v13  ;;  %v1245_v23 = vand.u32 2139095040, %v3311_v14  ;;  %v1042_v27 = vor.u32 8388608, %v1041_v16  ;;  %v1242_v42 = vand.u32 2147483647, %v3311_v14 }
 0x120   : > { %v2686_v22 = vadd.s32 4294967169, %v934_v17  ;;  %v3322_v24 = vpop.f32.mrb[4].mxu1  ;;  %v3324_v25 = vpop.f32.mrb[6].mxu0  ;;  %v938_v28 = vor.u32 8388608, %v937_v18 }
 0x121   : > { %v1044_v26 = vadd.s32 1, %v2690_v21  ;;  %v1246_v30 = vshrl.u32 %v1245_v23, 23  ;;  %v3326_v31 = vpop.f32.mrb[5].mxu1  ;;  %v3328_v32 = vpop.f32.mrb[7].mxu0  ;;  %v3332_v39 = vshll.u32 %v1042_v27, 8 }
 0x122   : > { %v940_v29 = vadd.s32 1, %v2686_v22  ;;  %v3336_v41 = vshll.u32 %v938_v28, 8 }
 0x123   : > { %vm1045_vm2 = vcmp.gt.s32.totalorder %v1044_v26, 0  ;;  %v2698_v34 = vadd.s32 4294967169, %v1246_v30 }
 0x124   : > { %v1046_v33 = vsel %vm1045_vm2, %v1044_v26, 0  ;;  %vm941_vm3 = vcmp.gt.s32.totalorder %v940_v29, 0  ;;  %v3330_v35 = vpop.f32.mrb[6].mxu1  ;;  %vm932_vm2 = vcmp.lt.s32.totalorder %v3303_v6, 0 }
 0x125   : > { %v1047_v36 = vshrl.u32 %v1046_v33, 5  ;;  %v1048_v37 = vand.u32 31, %v1046_v33  ;;  %v942_v38 = vsel %vm941_vm3, %v940_v29, 0  ;;  %v3340_v47 = vadd.s32 1, %v2698_v34  ;;  %v3355_v15 = vpop.f32.mrb[7].mxu1 }
 0x126   : > { %v3334_v40 = vshrl.u32 %v942_v38, 5  ;;  %v944_v46 = vand.u32 31, %v942_v38 }
 0x127   : > { %v1049_v43 = vsub.s32 32, %v1048_v37  ;;  %v1051_v45 = vshll.u32 %v3111_v44, %v1048_v37  ;;  %v1054_v49 = vshll.u32 %v3112_v48, %v1048_v37  ;;  %v1057_v51 = vshll.u32 %v3113_v50, %v1048_v37 }
 0x128   : > { %v1060_v53 = vshll.u32 %v3114_v52, %v1048_v37  ;;  %v1063_v55 = vshll.u32 %v3115_v54, %v1048_v37  ;;  %vm1066_vm4 = vcmp.lt.s32.totalorder %v1047_v36, 1  ;;  %vm1067_vm5 = vcmp.lt.s32.totalorder %v1047_v36, 2 }
 0x129   : > { %v1052_v56 = vshrl.u32 %v3112_v48, %v1049_v43  ;;  %v1055_v57 = vshrl.u32 %v3113_v50, %v1049_v43  ;;  %v1058_v58 = vshrl.u32 %v3114_v52, %v1049_v43  ;;  %v1050_v59 = vshrl.u32 %v3111_v44, %v1049_v43 }
 0x12a   : > { %v1061_v60 = vshrl.u32 %v3115_v54, %v1049_v43  ;;  %v1064_v62 = vshrl.u32 %v3116_v61, %v1049_v43  ;;  %v945_v2 = vsub.s32 32, %v944_v46  ;;  %vm1068_vm6 = vcmp.lt.s32.totalorder %v1047_v36, 3 }
 0x12b   : > { %v1053_v63 = vor.u32 %v1052_v56, %v1051_v45  ;;  %v1056_v0 = vor.u32 %v1055_v57, %v1054_v49  ;;  %v1059_v1 = vor.u32 %v1058_v58, %v1057_v51  ;;  %vm1069_vm7 = vcmp.lt.s32.totalorder %v1047_v36, 4 }
 0x12c   : > { %v1062_v4 = vor.u32 %v1061_v60, %v1060_v53  ;;  %v1065_v5 = vor.u32 %v1064_v62, %v1063_v55  ;;  %v947_v21 = vshll.u32 %v3111_v44, %v944_v46  ;;  %v948_v26 = vshrl.u32 %v3112_v48, %v945_v2 }
 0x12d   : > { %v1070_v8 = vsel %vm1066_vm4, %v1050_v59, %v1053_v63  ;;  %v1071_v10 = vsel %vm1069_vm7, %v1059_v1, 2102212464  ;;  %v1074_v11 = vsel %vm1066_vm4, %v1053_v63, %v1056_v0  ;;  %v1078_v13 = vsel %vm1066_vm4, %v1056_v0, %v1059_v1 }
 0x12e   : > { %v1072_v16 = vsel %vm1068_vm6, %v1056_v0, %v1071_v10  ;;  %v1075_v17 = vsel %vm1069_vm7, %v1062_v4, 920167782  ;;  %v1079_v18 = vsel %vm1069_vm7, %v1065_v5, 1326507024  ;;  %v950_v27 = vshll.u32 %v3112_v48, %v944_v46 }
 0x12f   : > { %v1076_v22 = vsel %vm1068_vm6, %v1059_v1, %v1075_v17  ;;  %v1080_v23 = vsel %vm1068_vm6, %v1062_v4, %v1079_v18  ;;  %v1073_v28 = vsel %vm1067_vm5, %v1070_v8, %v1072_v16  ;;  %v951_v33 = vshrl.u32 %v3113_v50, %v945_v2 }
 0x130   : > { %v1077_v29 = vsel %vm1067_vm5, %v1074_v11, %v1076_v22  ;;  %v1081_v30 = vsel %vm1067_vm5, %v1078_v13, %v1080_v23  ;;  %v949_v45 = vor.u32 %v948_v26, %v947_v21  ;;  %v953_v51 = vshll.u32 %v3113_v50, %v944_v46 }
 0x131   : > { %v3365_v34 = vmul.u32.u64.low %v3332_v39, %v1081_v30  ;;  %v3366_v37 = vmul.u32.u64.high %v3332_v39, %v1081_v30, %v3365_v34  ;;  %v3369_v38 = vmul.u32.u64.low %v3332_v39, %v1077_v29  ;;  %v3370_v43 = vmul.u32.u64.high %v3332_v39, %v1077_v29, %v3369_v38 }
 0x132   : > { %v952_v49 = vor.u32 %v951_v33, %v950_v27  ;;  %v954_v53 = vshrl.u32 %v3114_v52, %v945_v2  ;;  %v946_v36 = vshrl.u32 %v3111_v44, %v945_v2  ;;  %v956_v55 = vshll.u32 %v3114_v52, %v944_v46 }
 0x133   : > { %v957_v56 = vshrl.u32 %v3115_v54, %v945_v2  ;;  %v960_v57 = vshrl.u32 %v3116_v61, %v945_v2  ;;  %v1089_v58 = vmul.u32 %v3332_v39, %v1073_v28  ;;  %v959_v60 = vshll.u32 %v3115_v54, %v944_v46 }
 0x134   : > { %v955_v59 = vor.u32 %v954_v53, %v953_v51  ;;  %vm962_vm8 = vcmp.lt.s32.totalorder %v3334_v40, 1  ;;  %vm1091_vm9 = vc.u32 %v3366_v37, %v3369_v38  ;;  %v1092_v62 = vadd.s32 1, %v3370_v43 }
 0x135   : > { %v958_v63 = vor.u32 %v957_v56, %v956_v55  ;;  %vm963_vm10 = vcmp.lt.s32.totalorder %v3334_v40, 2  ;;  %v961_v0 = vor.u32 %v960_v57, %v959_v60  ;;  %vm964_vm11 = vcmp.lt.s32.totalorder %v3334_v40, 3 }
 0x136   : > { %vm965_vm12 = vcmp.lt.s32.totalorder %v3334_v40, 4  ;;  %v970_v1 = vsel %vm962_vm8, %v949_v45, %v952_v49  ;;  %v1093_v39 = vsel %vm1091_vm9, %v1092_v62, %v3370_v43  ;;  %v974_v4 = vsel %vm962_vm8, %v952_v49, %v955_v59 }
 0x137   : > { %v967_v2 = vsel %vm965_vm12, %v955_v59, 2102212464  ;;  %v971_v46 = vsel %vm965_vm12, %v958_v63, 920167782  ;;  %v1094_v5 = vadd.s32 %v1093_v39, %v1089_v58  ;;  %v966_v8 = vsel %vm962_vm8, %v946_v36, %v949_v45 }
 0x138   : > { %v972_v10 = vsel %vm964_vm11, %v955_v59, %v971_v46  ;;  %v975_v11 = vsel %vm965_vm12, %v961_v0, 1326507024  ;;  %v968_v13 = vsel %vm964_vm11, %v952_v49, %v967_v2  ;;  %vm1253_vm13 = vcmp.gt.s32.totalorder %v3340_v47, 0 }
 0x139   : > { %v973_v16 = vsel %vm963_vm10, %v970_v1, %v972_v10  ;;  %v976_v17 = vsel %vm964_vm11, %v958_v63, %v975_v11  ;;  %v1095_v18 = vadd.s32 536870912, %v1094_v5  ;;  %v969_v29 = vsel %vm963_vm10, %v966_v8, %v968_v13 }
 0x13a   : > { %v977_v21 = vsel %vm963_vm10, %v974_v4, %v976_v17  ;;  %v3395_v22 = vmul.u32.u64.low %v3336_v41, %v973_v16  ;;  %v3396_v23 = vmul.u32.u64.high %v3336_v41, %v973_v16, %v3395_v22  ;;  %v1254_v30 = vsel %vm1253_vm13, %v3340_v47, 0 }
 0x13b   : > { %v3399_v26 = vmul.u32.u64.low %v3336_v41, %v977_v21  ;;  %v3400_v27 = vmul.u32.u64.high %v3336_v41, %v977_v21, %v3399_v26  ;;  %v1096_v28 = vshrl.u32 %v1095_v18, 30  ;;  %v3407_v33 = vadd.f32 %v3309_v12, %v3322_v24 }
 0x13c   : > { %v3411_v34 = vadd.f32 %v3319_v20, %v3326_v31  ;;  %v988_v45 = vadd.s32 1, %v3396_v23  ;;  %v1249_v49 = vand.u32 8388607, %v1242_v42  ;;  %v985_v51 = vmul.u32 %v3336_v41, %v969_v29 }
 0x13d   : > { %v1097_v43 = vshll.u32 %v1096_v28, 30  ;;  %vm987_vm14 = vc.u32 %v3400_v27, %v3395_v22  ;;  %v1141_v40 = vand.u32 2139095040, %v3317_v19  ;;  %v1256_v24 = vand.u32 31, %v1254_v30 }
 0x13e   : > { %v989_v12 = vsel %vm987_vm14, %v988_v45, %v3396_v23  ;;  %v1250_v20 = vor.u32 8388608, %v1249_v49  ;;  %v1120_v31 = vsub.s32 4, %v1096_v28  ;;  %v1138_v60 = vand.u32 2147483647, %v3317_v19 }
 0x13f   : > { %v1098_v47 = vsub.s32 %v1094_v5, %v1097_v43  ;;  %v990_v53 = vadd.s32 %v989_v12, %v985_v51  ;;  %v1142_v56 = vshrl.u32 %v1141_v40, 23  ;;  %v1257_v58 = vsub.s32 32, %v1256_v24 }
 0x140   : > { %v1090_v62 = vadd.s32 %v3369_v38, %v3366_v37  ;;  %v3432_v0 = vshrl.u32 %v1254_v30, 5  ;;  %v3434_v1 = vshll.u32 %v1250_v20, 8  ;;  %v1121_v7 = vsel %vm1036_vm0, %v1120_v31, %v1096_v28 }
 0x141   : > { %v1100_v36 = vsub.s32 0, %v1098_v47  ;;  %v991_v55 = vadd.s32 536870912, %v990_v53  ;;  %v3439_v39 = vadd.s32 %v3395_v22, %v3400_v27  ;;  %v2694_v46 = vadd.s32 4294967169, %v1142_v56 }
 0x142   : > { %v1259_v5 = vshll.u32 %v3111_v44, %v1256_v24  ;;  %v1260_v8 = vshrl.u32 %v3112_v48, %v1257_v58  ;;  %v1262_v37 = vshll.u32 %v3112_v48, %v1256_v24  ;;  %v1263_v10 = vshrl.u32 %v3113_v50, %v1257_v58 }
 0x143   : > { %v2691_v57 = vmin.u32 %v1100_v36, %v1098_v47  ;;  %v3427_v59 = vshrl.u32 %v991_v55, 30  ;;  %v1266_v11 = vshrl.u32 %v3114_v52, %v1257_v58  ;;  %v1269_v13 = vshrl.u32 %v3115_v54, %v1257_v58 }
 0x144   : > { %v3452_v16 = vsel %vm3422_vm15, 0, %v1121_v7  ;;  %v1258_v17 = vshrl.u32 %v3111_v44, %v1257_v58  ;;  %v1272_v18 = vshrl.u32 %v3116_v61, %v1257_v58  ;;  %v1265_v23 = vshll.u32 %v3113_v50, %v1256_v24 }
 0x145   : > { %v1102_v63 = vclz %v2691_v57  ;;  %v993_v2 = vshll.u32 %v3427_v59, 30  ;;  %v1268_v26 = vshll.u32 %v3114_v52, %v1256_v24  ;;  %v1261_v29 = vor.u32 %v1260_v8, %v1259_v5 }
 0x146   : > { %v1271_v30 = vshll.u32 %v3115_v54, %v1256_v24  ;;  %v1264_v45 = vor.u32 %v1263_v10, %v1262_v37  ;;  %v1267_v49 = vor.u32 %v1266_v11, %v1265_v23  ;;  %v1016_v31 = vsub.s32 4, %v3427_v59 }
 0x147   : > { %v2692_v4 = vadd.s32 4294967294, %v1102_v63  ;;  %v3445_v38 = vsub.s32 %v990_v53, %v993_v2  ;;  %v1270_v51 = vor.u32 %v1269_v13, %v1268_v26  ;;  %vm1274_vm3 = vcmp.lt.s32.totalorder %v3432_v0, 1 }
 0x148   : > { %v1273_v36 = vor.u32 %v1272_v18, %v1271_v30  ;;  %vm1275_vm4 = vcmp.lt.s32.totalorder %v3432_v0, 2  ;;  %vm1276_vm5 = vcmp.lt.s32.totalorder %v3432_v0, 3  ;;  %vm1277_vm6 = vcmp.lt.s32.totalorder %v3432_v0, 4 }
 0x149   : > { %vm2693_vm1 = vcmp.lt.s32.totalorder %v2692_v4, 0  ;;  %v996_v22 = vsub.s32 0, %v3445_v38  ;;  %v1283_v57 = vsel %vm1277_vm6, %v1270_v51, 920167782  ;;  %v1286_v58 = vsel %vm1274_vm3, %v1264_v45, %v1267_v49 }
 0x14a   : > { %v1105_v21 = vsel %vm2693_vm1, 0, %v2692_v4  ;;  %vm3473_vm7 = vcmp.le.f32.partialorder %v930_v9, 0.7853982  ;;  %v1279_v7 = vsel %vm1277_vm6, %v1267_v49, 2102212464  ;;  %v1284_v2 = vsel %vm1276_vm5, %v1267_v49, %v1283_v57 }
 0x14b   : > { %v1106_v27 = vsub.s32 32, %v1105_v21  ;;  %v1110_v28 = vsub.s32 4294967266, %v1105_v21  ;;  %v2687_v43 = vmin.u32 %v996_v22, %v3445_v38  ;;  %v1107_v40 = vshll.u32 %v1098_v47, %v1105_v21 }
 0x14c   : > { %v1282_v47 = vsel %vm1274_vm3, %v1261_v29, %v1264_v45  ;;  %v1287_v4 = vsel %vm1277_vm6, %v1273_v36, 1326507024  ;;  %v1278_v8 = vsel %vm1274_vm3, %v1258_v17, %v1261_v29  ;;  %v1280_v22 = vsel %vm1276_vm5, %v1264_v45, %v1279_v7 }
 0x14d   : > { %v1108_v12 = vshrl.u32 %v1090_v62, %v1106_v27  ;;  %v1111_v53 = vadd.s32 127, %v1110_v28  ;;  %v998_v20 = vclz %v2687_v43  ;;  %v1288_v37 = vsel %vm1276_vm5, %v1270_v51, %v1287_v4 }
 0x14e   : > { %v1285_v9 = vsel %vm1275_vm4, %v1282_v47, %v1284_v2  ;;  %v1289_v13 = vsel %vm1275_vm4, %v1286_v58, %v1288_v37  ;;  %v1148_v23 = vadd.s32 1, %v2694_v46  ;;  %v1017_v46 = vsel %vm932_vm2, %v1016_v31, %v3427_v59 }
 0x14f   : > { %v1109_v55 = vor.u32 %v1108_v12, %v1107_v40  ;;  %v1112_v24 = vshll.u32 %v1111_v53, 23  ;;  %v2688_v56 = vadd.s32 4294967294, %v998_v20  ;;  %v1127_v40 = vadd.s32 3, %v3452_v16 }
 0x150   : > { %v3491_v27 = vmul.u32.u64.low %v3434_v1, %v1289_v13  ;;  %v3492_v28 = vmul.u32.u64.high %v3434_v1, %v1289_v13, %v3491_v27  ;;  %v3496_v43 = vmul.u32.u64.low %v3434_v1, %v1285_v9  ;;  %v3497_v49 = vmul.u32.u64.high %v3434_v1, %v1285_v9, %v3496_v43 }
 0x151   : > { %v1113_v62 = vor.u32 4788187, %v1112_v24  ;;  %v1116_v5 = vcvt.s32.f32 %v1109_v55  ;;  %vm2689_vm8 = vcmp.lt.s32.totalorder %v2688_v56, 0  ;;  %vm1149_vm9 = vcmp.gt.s32.totalorder %v1148_v23, 0 }
 0x152   : > { %v1001_v11 = vsel %vm2689_vm8, 0, %v2688_v56  ;;  %v1281_v12 = vsel %vm1275_vm4, %v1278_v8, %v1280_v22  ;;  %v3509_v36 = vand.u32 3, %v3452_v16  ;;  %vm1299_vm10 = vc.u32 %v3492_v28, %v3496_v43 }
 0x153   : > { %v1114_v10 = vand.u32 2147483647, %v1113_v62  ;;  %v1002_v18 = vsub.s32 32, %v1001_v11  ;;  %v1006_v21 = vsub.s32 4294967266, %v1001_v11  ;;  %v1003_v17 = vshll.u32 %v3445_v38, %v1001_v11 }
 0x154   : > { %v1145_v20 = vand.u32 8388607, %v1138_v60  ;;  %v1019_v0 = vsel %vm3473_vm7, 0, %v1017_v46  ;;  %v1300_v55 = vadd.s32 1, %v3497_v49  ;;  %v3521_v24 = vand.u32 3, %v1127_v40 }
 0x155   : > { %v1117_v26 = vmul.f32 %v1116_v5, %v1114_v10  ;;  %v1004_v29 = vshrl.u32 %v3439_v39, %v1002_v18  ;;  %v1007_v30 = vadd.s32 127, %v1006_v21  ;;  %v1150_v39 = vsel %vm1149_vm9, %v1148_v23, 0 }
 0x156   : > { %v1297_v16 = vmul.u32 %v3434_v1, %v1281_v12  ;;  %v1152_v56 = vand.u32 31, %v1150_v39  ;;  %v1301_v58 = vsel %vm1299_vm10, %v1300_v55, %v3497_v49  ;;  %v1023_v62 = vadd.s32 3, %v1019_v0 }
 0x157   : > { %v1118_v51 = vxor.u32 2147483648, %v1117_v26  ;;  %v1005_v38 = vor.u32 %v1004_v29, %v1003_v17  ;;  %v1008_v45 = vshll.u32 %v1007_v30, 23  ;;  %v1146_v7 = vor.u32 8388608, %v1145_v20 }
 0x158   : > { %v1302_v41 = vadd.s32 %v1301_v58, %v1297_v16  ;;  %v1153_v2 = vsub.s32 32, %v1152_v56  ;;  %v3525_v5 = vand.u32 3, %v1019_v0  ;;  %v3527_v8 = vshrl.u32 %v1150_v39, 5 }
 0x159   : > { %v1119_v53 = vsel %vm1036_vm0, %v1118_v51, %v1117_v26  ;;  %v1009_v31 = vor.u32 4788187, %v1008_v45  ;;  %v1012_v57 = vcvt.s32.f32 %v1005_v38  ;;  %v1155_v37 = vshll.u32 %v3111_v44, %v1152_v56 }
 0x15a   : > { %v1122_v59 = vsel %vm3422_vm15, %v3301_v3, %v1119_v53  ;;  %vm1133_vm11 = vcmp.eq.s32.totalorder %v3521_v24, 2  ;;  %vm1971_vm12 = vcmp.eq.s32.totalorder %v3509_v36, 2  ;;  %v1303_v1 = vadd.s32 536870912, %v1302_v41 }
 0x15b   : > { %3015 = vcosq.f32 %v1122_v59  ;;  %v1010_v47 = vand.u32 2147483647, %v1009_v31  ;;  %v1156_v10 = vshrl.u32 %v3112_v48, %v1153_v2  ;;  %v1159_v11 = vshrl.u32 %v3113_v50, %v1153_v2 }
 0x15c   : > { %3017 = vsinq.f32 %v1122_v59  ;;  %v1161_v9 = vshll.u32 %v3113_v50, %v1152_v56  ;;  %vm1130_vm13 = vcmp.eq.s32.totalorder %v3521_v24, 0  ;;  %vm1968_vm14 = vcmp.eq.s32.totalorder %v3509_v36, 0 }
 0x15d   : > { %v1013_v4 = vmul.f32 %v1012_v57, %v1010_v47  ;;  %v1162_v18 = vshrl.u32 %v3114_v52, %v1153_v2  ;;  %v1164_v21 = vshll.u32 %v3114_v52, %v1152_v56  ;;  %v1165_v22 = vshrl.u32 %v3115_v54, %v1153_v2 }
 0x15e   : > { %vm1129_vm15 = vcmp.lt.s32.totalorder %v3521_v24, 2  ;;  %vm1967_vm0 = vcmp.lt.s32.totalorder %v3509_v36, 2  ;;  %v3542_v23 = vand.u32 3, %v1023_v62  ;;  %v3544_v26 = vshrl.u32 %v1303_v1, 30 }
 0x15f   : > { %v1014_v13 = vxor.u32 2147483648, %v1013_v4  ;;  %v1158_v17 = vshll.u32 %v3112_v48, %v1152_v56  ;;  %v3547_v27 = vshll.u32 %v1146_v7, 8  ;;  %vm1126_vm1 = vweird.f32 %v3301_v3 }
 0x160   : > { %v1157_v30 = vor.u32 %v1156_v10, %v1155_v37  ;;  %v1163_v49 = vor.u32 %v1162_v18, %v1161_v9  ;;  %v1166_v51 = vor.u32 %v1165_v22, %v1164_v21  ;;  %v1305_v46 = vshll.u32 %v3544_v26, 30 }
 0x161   : > { %v1015_v29 = vsel %vm932_vm2, %v1014_v13, %v1013_v4  ;;  %v1160_v38 = vor.u32 %v1159_v11, %v1158_v17  ;;  %vm1173_vm3 = vcmp.lt.s32.totalorder %v3527_v8, 4  ;;  %v1168_v45 = vshrl.u32 %v3116_v61, %v1153_v2 }
 0x162   : > { %v1018_v40 = vsel %vm3473_vm7, %v3303_v6, %v1015_v29  ;;  %vm1170_vm4 = vcmp.lt.s32.totalorder %v3527_v8, 1  ;;  %v1179_v12 = vsel %vm1173_vm3, %v1166_v51, 920167782  ;;  %v3562_v53 = vsub.s32 %v1302_v41, %v1305_v46 }
 0x163   : > { %3019 = vcosq.f32 %v1018_v40  ;;  %vm1171_vm2 = vcmp.lt.s32.totalorder %v3527_v8, 2  ;;  %vm1172_vm5 = vcmp.lt.s32.totalorder %v3527_v8, 3  ;;  %v1154_v59 = vshrl.u32 %v3111_v44, %v1153_v2 }
 0x164   : > { %3021 = vsinq.f32 %v1018_v40  ;;  %v1167_v31 = vshll.u32 %v3115_v54, %v1152_v56  ;;  %v1175_v0 = vsel %vm1173_vm3, %v1163_v49, 2102212464  ;;  %vm1244_vm6 = vcmp.lt.s32.totalorder %v3311_v14, 0 }
 0x165   : > { %v3016_v39 = vpop.eup %3015  ;;  %v1308_v16 = vsub.s32 0, %v3562_v53  ;;  %v1178_v47 = vsel %vm1170_vm4, %v1157_v30, %v1160_v38  ;;  %v1180_v57 = vsel %vm1172_vm5, %v1163_v49, %v1179_v12  ;;  %vm1868_vm7 = vcmp.eq.s32.totalorder %v3525_v5, 2 }
 0x166   : > { %v3018_v63 = vpop.eup %3017  ;;  %v1134_v20 = vxor.u32 2147483648, %v3016_v39  ;;  %v1169_v62 = vor.u32 %v1168_v45, %v1167_v31  ;;  %v1174_v41 = vsel %vm1170_vm4, %v1154_v59, %v1157_v30  ;;  %vm1865_vm8 = vcmp.eq.s32.totalorder %v3525_v5, 0 }
 0x167   : > { %v1131_v55 = vxor.u32 2147483648, %v3018_v63  ;;  %v2699_v4 = vmin.u32 %v1308_v16, %v3562_v53  ;;  %v1176_v37 = vsel %vm1172_vm5, %v1160_v38, %v1175_v0  ;;  %vm1025_vm9 = vcmp.lt.s32.totalorder %v3542_v23, 2 }
 0x168   : > { %v1135_v58 = vsel %vm1133_vm11, %v1134_v20, %v3018_v63  ;;  %v1973_v56 = vsel %vm1971_vm12, %v1134_v20, %v3018_v63  ;;  %vm1864_vm10 = vcmp.lt.s32.totalorder %v3525_v5, 2  ;;  %v1181_v11 = vsel %vm1171_vm2, %v1178_v47, %v1180_v57 }
 0x169   : > { %v1132_v7 = vsel %vm1130_vm13, %v3016_v39, %v1131_v55  ;;  %v1970_v2 = vsel %vm1968_vm14, %v3016_v39, %v1131_v55  ;;  %v1453_v9 = vand.u32 2139095040, %v3407_v33  ;;  %vm1022_vm11 = vweird.f32 %v3303_v6 }
 0x16a   : > { %v1136_v1 = vsel %vm1129_vm15, %v1132_v7, %v1135_v58  ;;  %v1974_v10 = vsel %vm1967_vm0, %v1970_v2, %v1973_v56  ;;  %v1310_v24 = vclz %v2699_v4  ;;  %v1182_v36 = vsel %vm1170_vm4, %v1160_v38, %v1163_v49 }
 0x16b   : > { %v1137_v13 = vsel %vm1126_vm1, nan, %v1136_v1  ;;  %v1975_v18 = vsel %vm1126_vm1, nan, %v1974_v10  ;;  %vm1026_vm12 = vcmp.eq.s32.totalorder %v3542_v23, 0  ;;  %v1328_v21 = vsub.s32 4, %v3544_v26 }
 0x16c   : > { %1763 = vst [vmem:[%s3612_s30 + $0x10] sm:$0xff] %v1137_v13  ;;  %2595 = vst [vmem:[%s3612_s30 + $0x18] sm:$0xff] %v1975_v18  ;;  %v1177_v3 = vsel %vm1171_vm2, %v1174_v41, %v1176_v37  ;;  %v1183_v22 = vsel %vm1173_vm3, %v1169_v62, 1326507024  ;;  %v2700_v17 = vadd.s32 4294967294, %v1310_v24  ;;  %vm1029_vm13 = vcmp.eq.s32.totalorder %v3542_v23, 2 }
 0x16d   : > { %v1184_v29 = vsel %vm1172_vm5, %v1166_v51, %v1183_v22  ;;  %v3625_v30 = vmul.u32.u64.low %v3547_v27, %v1181_v11  ;;  %v3626_v49 = vmul.u32.u64.high %v3547_v27, %v1181_v11, %v3625_v30  ;;  %v3020_v40 = vpop.eup %3019  ;;  %v1298_v46 = vadd.s32 %v3496_v43, %v3492_v28 }
 0x16e   : > { %v1185_v38 = vsel %vm1171_vm2, %v1182_v36, %v1184_v29  ;;  %v1454_v45 = vshrl.u32 %v1453_v9, 23  ;;  %v3022_v12 = vpop.eup %3021  ;;  %v1030_v39 = vxor.u32 2147483648, %v3020_v40  ;;  %vm2701_vm14 = vcmp.lt.s32.totalorder %v2700_v17, 0 }
 0x16f   : > { %v3635_v51 = vmul.u32.u64.low %v3547_v27, %v1185_v38  ;;  %v3636_v63 = vmul.u32.u64.high %v3547_v27, %v1185_v38, %v3635_v51  ;;  %v1027_v20 = vxor.u32 2147483648, %v3022_v12  ;;  %v1313_v59 = vsel %vm2701_vm14, 0, %v2700_v17 }
 0x170   : > { %v1329_v31 = vsel %vm1244_vm6, %v1328_v21, %v3544_v26  ;;  %v1193_v0 = vmul.u32 %v3547_v27, %v1177_v3  ;;  %v1031_v28 = vsel %vm1029_vm13, %v1030_v39, %v3022_v12  ;;  %v1870_v43 = vsel %vm1868_vm7, %v1030_v39, %v3022_v12 }
 0x171   : > { %v1314_v8 = vsub.s32 32, %v1313_v59  ;;  %v2706_v55 = vadd.s32 4294967169, %v1454_v45  ;;  %v1028_v16 = vsel %vm1026_vm12, %v3020_v40, %v1027_v20  ;;  %v1867_v47 = vsel %vm1865_vm8, %v3020_v40, %v1027_v20 }
 0x172   : > { %v1318_v57 = vsub.s32 4294967266, %v1313_v59  ;;  %v1196_v58 = vadd.s32 1, %v3626_v49  ;;  %v1032_v26 = vsel %vm1025_vm9, %v1028_v16, %v1031_v28  ;;  %v1871_v27 = vsel %vm1864_vm10, %v1867_v47, %v1870_v43 }
 0x173   : > { %v1315_v56 = vshll.u32 %v3562_v53, %v1313_v59  ;;  %v1316_v62 = vshrl.u32 %v1298_v46, %v1314_v8  ;;  %v1033_v41 = vsel %vm1022_vm11, nan, %v1032_v26  ;;  %v1872_v7 = vsel %vm1022_vm11, nan, %v1871_v27 }
 0x174   : > { %v1319_v2 = vadd.s32 127, %v1318_v57  ;;  %vm1195_vm15 = vc.u32 %v3636_v63, %v3625_v30  ;;  %1762 = vst [vmem:[%s3612_s30] sm:$0xff] %v1033_v41  ;;  %2594 = vst [vmem:[%s3612_s30 + $0x8] sm:$0xff] %v1872_v7  ;;  %vm3664_vm0 = vcmp.le.f32.partialorder %v1242_v42, 0.7853982  ;;  %v1450_v53 = vand.u32 2147483647, %v3407_v33 }
 0x175   : > { %v1197_v23 = vsel %vm1195_vm15, %v1196_v58, %v3626_v49  ;;  %v1460_v4 = vadd.s32 1, %v2706_v55  ;;  %v1317_v37 = vor.u32 %v1316_v62, %v1315_v56  ;;  %v1331_v1 = vsel %vm3664_vm0, 0, %v1329_v31 }
 0x176   : > { %v1320_v6 = vshll.u32 %v1319_v2, 23  ;;  %v1198_v10 = vadd.s32 %v1197_v23, %v1193_v0  ;;  %v1335_v18 = vadd.s32 3, %v1331_v1  ;;  %v1457_v42 = vand.u32 8388607, %v1450_v53 }
 0x177   : > { %vm1461_vm1 = vcmp.gt.s32.totalorder %v1460_v4, 0  ;;  %v1324_v21 = vcvt.s32.f32 %v1317_v37  ;;  %v3676_v22 = vadd.f32 %v3324_v25, %v3330_v35  ;;  %v3678_v49 = vand.u32 3, %v1331_v1 }
 0x178   : > { %v1321_v11 = vor.u32 4788187, %v1320_v6  ;;  %v1199_v9 = vadd.s32 536870912, %v1198_v10  ;;  %v1462_v13 = vsel %vm1461_vm1, %v1460_v4, 0  ;;  %vm1140_vm3 = vcmp.lt.s32.totalorder %v3317_v19, 0 }
 0x179   : > { %v1464_v24 = vand.u32 31, %v1462_v13  ;;  %v3681_v46 = vand.u32 3, %v1335_v18  ;;  %v1458_v38 = vor.u32 8388608, %v1457_v42  ;;  %v1463_v45 = vshrl.u32 %v1462_v13, 5 }
 0x17a   : > { %v1322_v36 = vand.u32 2147483647, %v1321_v11  ;;  %v1200_v3 = vshrl.u32 %v1199_v9, 30  ;;  %vm3696_vm4 = vcmp.le.f32.partialorder %v1138_v60, 0.7853982  ;;  %v1194_v62 = vadd.s32 %v3625_v30, %v3636_v63 }
 0x17b   : > { %v1465_v17 = vsub.s32 32, %v1464_v24  ;;  %v1467_v35 = vshll.u32 %v3111_v44, %v1464_v24  ;;  %v1470_v59 = vshll.u32 %v3112_v48, %v1464_v24  ;;  %v1473_v31 = vshll.u32 %v3113_v50, %v1464_v24 }
 0x17c   : > { %v1325_v29 = vmul.f32 %v1324_v21, %v1322_v36  ;;  %v1201_v40 = vshll.u32 %v1200_v3, 30  ;;  %v1224_v55 = vsub.s32 4, %v1200_v3  ;;  %v1476_v16 = vshll.u32 %v3114_v52, %v1464_v24 }
 0x17d   : > { %v1468_v12 = vshrl.u32 %v3112_v48, %v1465_v17  ;;  %v1471_v20 = vshrl.u32 %v3113_v50, %v1465_v17  ;;  %v1474_v25 = vshrl.u32 %v3114_v52, %v1465_v17  ;;  %v1477_v0 = vshrl.u32 %v3115_v54, %v1465_v17 }
 0x17e   : > { %v1326_v39 = vxor.u32 2147483648, %v1325_v29  ;;  %v3684_v51 = vsub.s32 %v1198_v10, %v1201_v40  ;;  %v1479_v58 = vshll.u32 %v3115_v54, %v1464_v24  ;;  %v1480_v26 = vshrl.u32 %v3116_v61, %v1465_v17 }
 0x17f   : > { %v1469_v57 = vor.u32 %v1468_v12, %v1467_v35  ;;  %v1472_v27 = vor.u32 %v1471_v20, %v1470_v59  ;;  %v1475_v56 = vor.u32 %v1474_v25, %v1473_v31  ;;  %v1478_v41 = vor.u32 %v1477_v0, %v1476_v16 }
 0x180   : > { %v1327_v28 = vsel %vm1244_vm6, %v1326_v39, %v1325_v29  ;;  %v1204_v8 = vsub.s32 0, %v3684_v51  ;;  %v1481_v7 = vor.u32 %v1480_v26, %v1479_v58  ;;  %v1466_v5 = vshrl.u32 %v3111_v44, %v1465_v17 }
 0x181   : > { %v1330_v47 = vsel %vm3664_vm0, %v3311_v14, %v1327_v28  ;;  %v3711_v23 = vshll.u32 %v1458_v38, 8  ;;  %v1349_v4 = vand.u32 2139095040, %v3411_v34  ;;  %v1225_v37 = vsel %vm1140_vm3, %v1224_v55, %v1200_v3 }
 0x182   : > { %3023 = vcosq.f32 %v1330_v47  ;;  %v2695_v60 = vmin.u32 %v1204_v8, %v3684_v51  ;;  %vm1482_vm2 = vcmp.lt.s32.totalorder %v1463_v45, 1  ;;  %vm1484_vm5 = vcmp.lt.s32.totalorder %v1463_v45, 3 }
 0x183   : > { %3025 = vsinq.f32 %v1330_v47  ;;  %vm1485_vm6 = vcmp.lt.s32.totalorder %v1463_v45, 4  ;;  %vm1341_vm7 = vcmp.eq.s32.totalorder %v3681_v46, 2  ;;  %v1486_v1 = vsel %vm1482_vm2, %v1466_v5, %v1469_v57 }
 0x184   : > { %v1206_v2 = vclz %v2695_v60  ;;  %v1487_v30 = vsel %vm1485_vm6, %v1475_v56, 2102212464  ;;  %v1490_v63 = vsel %vm1482_vm2, %v1469_v57, %v1472_v27  ;;  %vm1338_vm8 = vcmp.eq.s32.totalorder %v3681_v46, 0 }
 0x185   : > { %vm2174_vm9 = vcmp.eq.s32.totalorder %v3678_v49, 0  ;;  %v1488_v10 = vsel %vm1484_vm5, %v1472_v27, %v1487_v30  ;;  %v1491_v11 = vsel %vm1485_vm6, %v1478_v41, 920167782  ;;  %v1494_v9 = vsel %vm1482_vm2, %v1472_v27, %v1475_v56 }
 0x186   : > { %v2696_v6 = vadd.s32 4294967294, %v1206_v2  ;;  %v1495_v13 = vsel %vm1485_vm6, %v1481_v7, 1326507024  ;;  %vm1337_vm10 = vcmp.lt.s32.totalorder %v3681_v46, 2  ;;  %vm2173_vm11 = vcmp.lt.s32.totalorder %v3678_v49, 2 }
 0x187   : > { %vm1483_vm13 = vcmp.lt.s32.totalorder %v1463_v45, 2  ;;  %v1492_v18 = vsel %vm1484_vm5, %v1475_v56, %v1491_v11  ;;  %v1496_v42 = vsel %vm1484_vm5, %v1478_v41, %v1495_v13  ;;  %vm1334_vm14 = vweird.f32 %v3311_v14 }
 0x188   : > { %vm2697_vm12 = vcmp.lt.s32.totalorder %v2696_v6, 0  ;;  %v1227_v36 = vsel %vm3696_vm4, 0, %v1225_v37  ;;  %v1493_v21 = vsel %vm1483_vm13, %v1490_v63, %v1492_v18  ;;  %v1497_v3 = vsel %vm1483_vm13, %v1494_v9, %v1496_v42 }
 0x189   : > { %v1209_v24 = vsel %vm2697_vm12, 0, %v2696_v6  ;;  %v1489_v40 = vsel %vm1483_vm13, %v1486_v1, %v1488_v10  ;;  %v1350_v38 = vshrl.u32 %v1349_v4, 23  ;;  %vm2177_vm15 = vcmp.eq.s32.totalorder %v3678_v49, 2 }
 0x18a   : > { %v1210_v17 = vsub.s32 32, %v1209_v24  ;;  %v1214_v29 = vsub.s32 4294967266, %v1209_v24  ;;  %v3728_v12 = vmul.u32.u64.low %v3711_v23, %v1497_v3  ;;  %v3729_v39 = vmul.u32.u64.high %v3711_v23, %v1497_v3, %v3728_v12 }
 0x18b   : > { %v3732_v20 = vmul.u32.u64.low %v3711_v23, %v1493_v21  ;;  %v3733_v45 = vmul.u32.u64.high %v3711_v23, %v1493_v21, %v3732_v20  ;;  %v1211_v35 = vshll.u32 %v3684_v51, %v1209_v24  ;;  %v2702_v0 = vadd.s32 4294967169, %v1350_v38 }
 0x18c   : > { %v3024_v25 = vpop.eup %3023  ;;  %v1212_v59 = vshrl.u32 %v1194_v62, %v1210_v17  ;;  %v1215_v31 = vadd.s32 127, %v1214_v29  ;;  %v1231_v55 = vadd.s32 3, %v1227_v36  ;;  %v1346_v16 = vand.u32 2147483647, %v3411_v34 }
 0x18d   : > { %v3026_v28 = vpop.eup %3025  ;;  %v1342_v8 = vxor.u32 2147483648, %v3024_v25  ;;  %v1356_v26 = vadd.s32 1, %v2702_v0  ;;  %v1505_v51 = vmul.u32 %v3711_v23, %v1489_v40  ;;  %vm1507_vm0 = vc.u32 %v3729_v39, %v3732_v20 }
 0x18e   : > { %v1339_v47 = vxor.u32 2147483648, %v3026_v28  ;;  %v1213_v57 = vor.u32 %v1212_v59, %v1211_v35  ;;  %v1216_v58 = vshll.u32 %v1215_v31, 23  ;;  %v1508_v4 = vadd.s32 1, %v3733_v45 }
 0x18f   : > { %v1343_v60 = vsel %vm1341_vm7, %v1342_v8, %v3026_v28  ;;  %v2179_v27 = vsel %vm2177_vm15, %v1342_v8, %v3026_v28  ;;  %vm1357_vm1 = vcmp.gt.s32.totalorder %v1356_v26, 0  ;;  %v1353_v49 = vand.u32 8388607, %v1346_v16 }
 0x190   : > { %v1340_v56 = vsel %vm1338_vm8, %v3024_v25, %v1339_v47  ;;  %v2176_v62 = vsel %vm2174_vm9, %v3024_v25, %v1339_v47  ;;  %v1217_v41 = vor.u32 4788187, %v1216_v58  ;;  %v1220_v7 = vcvt.s32.f32 %v1213_v57 }
 0x191   : > { %v1344_v2 = vsel %vm1337_vm10, %v1340_v56, %v1343_v60  ;;  %v2180_v5 = vsel %vm2173_vm11, %v2176_v62, %v2179_v27  ;;  %v1358_v1 = vsel %vm1357_vm1, %v1356_v26, 0  ;;  %v1509_v30 = vsel %vm1507_vm0, %v1508_v4, %v3733_v45 }
 0x192   : > { %v1345_v23 = vsel %vm1334_vm14, nan, %v1344_v2  ;;  %v2181_v37 = vsel %vm1334_vm14, nan, %v2180_v5  ;;  %v1218_v6 = vand.u32 2147483647, %v1217_v41  ;;  %v1360_v46 = vand.u32 31, %v1358_v1 }
 0x193   : > { %1765 = vst [vmem:[%s3612_s30 + $0x30] sm:$0xff] %v1345_v23  ;;  %2597 = vst [vmem:[%s3612_s30 + $0x38] sm:$0xff] %v2181_v37  ;;  %v1510_v10 = vadd.s32 %v1509_v30, %v1505_v51  ;;  %v3762_v13 = vand.u32 3, %v1231_v55  ;;  %v3764_v18 = vand.u32 3, %v1227_v36  ;;  %v3766_v42 = vshrl.u32 %v1358_v1, 5 }
 0x194   : > { %v1221_v63 = vmul.f32 %v1220_v7, %v1218_v6  ;;  %v1361_v11 = vsub.s32 32, %v1360_v46  ;;  %v1363_v12 = vshll.u32 %v3111_v44, %v1360_v46  ;;  %v1372_v45 = vshll.u32 %v3114_v52, %v1360_v46 }
 0x195   : > { %v1511_v14 = vadd.s32 536870912, %v1510_v10  ;;  %v1375_v25 = vshll.u32 %v3115_v54, %v1360_v46  ;;  %v1366_v59 = vshll.u32 %v3112_v48, %v1360_v46  ;;  %v1369_v31 = vshll.u32 %v3113_v50, %v1360_v46 }
 0x196   : > { %v1222_v9 = vxor.u32 2147483648, %v1221_v63  ;;  %v1364_v24 = vshrl.u32 %v3112_v48, %v1361_v11  ;;  %v1367_v21 = vshrl.u32 %v3113_v50, %v1361_v11  ;;  %v1370_v3 = vshrl.u32 %v3114_v52, %v1361_v11 }
 0x197   : > { %v3773_v29 = vshrl.u32 %v1511_v14, 30  ;;  %v1373_v40 = vshrl.u32 %v3115_v54, %v1361_v11  ;;  %v1376_v38 = vshrl.u32 %v3116_v61, %v1361_v11  ;;  %v1661_v8 = vand.u32 2139095040, %v3676_v22 }
 0x198   : > { %v1223_v17 = vsel %vm1140_vm3, %v1222_v9, %v1221_v63  ;;  %v1365_v55 = vor.u32 %v1364_v24, %v1363_v12  ;;  %v1368_v47 = vor.u32 %v1367_v21, %v1366_v59  ;;  %v1371_v57 = vor.u32 %v1370_v3, %v1369_v31 }
 0x199   : > { %v1226_v36 = vsel %vm3696_vm4, %v3317_v19, %v1223_v17  ;;  %v1513_v35 = vshll.u32 %v3773_v29, 30  ;;  %v1374_v0 = vor.u32 %v1373_v40, %v1372_v45  ;;  %v1377_v28 = vor.u32 %v1376_v38, %v1375_v25 }
 0x19a   : > { %3027 = vcosq.f32 %v1226_v36  ;;  %vm2074_vm3 = vcmp.eq.s32.totalorder %v3764_v18, 2  ;;  %v1354_v26 = vor.u32 8388608, %v1353_v49  ;;  %vm1381_vm4 = vcmp.lt.s32.totalorder %v3766_v42, 4 }
 0x19b   : > { %3029 = vsinq.f32 %v1226_v36  ;;  %v3787_v43 = vsub.s32 %v1510_v10, %v1513_v35  ;;  %vm1234_vm2 = vcmp.eq.s32.totalorder %v3762_v13, 0  ;;  %vm2071_vm5 = vcmp.eq.s32.totalorder %v3764_v18, 0 }
 0x19c   : > { %vm1452_vm6 = vcmp.lt.s32.totalorder %v3407_v33, 0  ;;  %vm1378_vm7 = vcmp.lt.s32.totalorder %v3766_v42, 1  ;;  %v1387_v60 = vsel %vm1381_vm4, %v1374_v0, 920167782  ;;  %v1391_v27 = vsel %vm1381_vm4, %v1377_v28, 1326507024 }
 0x19d   : > { %v1516_v58 = vsub.s32 0, %v3787_v43  ;;  %v1662_v51 = vshrl.u32 %v1661_v8, 23  ;;  %vm1233_vm8 = vcmp.lt.s32.totalorder %v3762_v13, 2  ;;  %vm2070_vm9 = vcmp.lt.s32.totalorder %v3764_v18, 2 }
 0x19e   : > { %vm1380_vm10 = vcmp.lt.s32.totalorder %v3766_v42, 3  ;;  %v1386_v62 = vsel %vm1378_vm7, %v1365_v55, %v1368_v47  ;;  %v1390_v41 = vsel %vm1378_vm7, %v1368_v47, %v1371_v57  ;;  %vm1230_vm11 = vweird.f32 %v3317_v19 }
 0x19f   : > { %v2707_v56 = vmin.u32 %v1516_v58, %v3787_v43  ;;  %vm1237_vm12 = vcmp.eq.s32.totalorder %v3762_v13, 2  ;;  %v1506_v7 = vadd.s32 %v3732_v20, %v3729_v39  ;;  %v1388_v2 = vsel %vm1380_vm10, %v1371_v57, %v1387_v60 }
 0x1a0   : > { %v1392_v5 = vsel %vm1380_vm10, %v1374_v0, %v1391_v27  ;;  %v1362_v23 = vshrl.u32 %v3111_v44, %v1361_v11  ;;  %vm1379_vm13 = vcmp.lt.s32.totalorder %v3766_v42, 2  ;;  %v1394_v37 = vshll.u32 %v1354_v26, 8 }
 0x1a1   : > { %v1518_v4 = vclz %v2707_v56  ;;  %v1383_v6 = vsel %vm1381_vm4, %v1371_v57, 2102212464  ;;  %v1389_v1 = vsel %vm1379_vm13, %v1386_v62, %v1388_v2  ;;  %v1393_v39 = vsel %vm1379_vm13, %v1390_v41, %v1392_v5 }
 0x1a2   : > { %v2714_v20 = vadd.s32 4294967169, %v1662_v51  ;;  %v1536_v63 = vsub.s32 4, %v3773_v29  ;;  %v3825_v10 = vmul.u32.u64.low %v1394_v37, %v1393_v39  ;;  %v3826_v49 = vmul.u32.u64.high %v1394_v37, %v1393_v39, %v3825_v10 }
 0x1a3   : > { %v2708_v46 = vadd.s32 4294967294, %v1518_v4  ;;  %v1382_v14 = vsel %vm1378_vm7, %v1362_v23, %v1365_v55  ;;  %v3830_v24 = vmul.u32.u64.low %v1394_v37, %v1389_v1  ;;  %v3831_v21 = vmul.u32.u64.high %v1394_v37, %v1389_v1, %v3830_v24 }
 0x1a4   : > { %v3028_v30 = vpop.eup %3027  ;;  %v1384_v17 = vsel %vm1380_vm10, %v1368_v47, %v1383_v6  ;;  %v3838_v40 = vadd.f32 %v3328_v32, %v3355_v15  ;;  %v1668_v45 = vadd.s32 1, %v2714_v20  ;;  %v1537_v32 = vsel %vm1452_vm6, %v1536_v63, %v3773_v29 }
 0x1a5   : > { %v3030_v11 = vpop.eup %3029  ;;  %v1238_v9 = vxor.u32 2147483648, %v3028_v30  ;;  %vm2709_vm14 = vcmp.lt.s32.totalorder %v2708_v46, 0  ;;  %v1385_v28 = vsel %vm1379_vm13, %v1382_v14, %v1384_v17  ;;  %vm1403_vm15 = vc.u32 %v3826_v49, %v3830_v24 }
 0x1a6   : > { %v1235_v3 = vxor.u32 2147483648, %v3030_v11  ;;  %v1521_v12 = vsel %vm2709_vm14, 0, %v2708_v46  ;;  %v1404_v29 = vadd.s32 1, %v3831_v21  ;;  %vm1669_vm0 = vcmp.gt.s32.totalorder %v1668_v45, 0 }
 0x1a7   : > { %v1239_v38 = vsel %vm1237_vm12, %v1238_v9, %v3030_v11  ;;  %v2076_v36 = vsel %vm2074_vm3, %v1238_v9, %v3030_v11  ;;  %v1522_v59 = vsub.s32 32, %v1521_v12  ;;  %v1526_v0 = vsub.s32 4294967266, %v1521_v12 }
 0x1a8   : > { %v1236_v25 = vsel %vm1234_vm2, %v3028_v30, %v1235_v3  ;;  %v2073_v35 = vsel %vm2071_vm5, %v3028_v30, %v1235_v3  ;;  %v1523_v13 = vshll.u32 %v3787_v43, %v1521_v12  ;;  %vm3869_vm1 = vcmp.le.f32.partialorder %v1450_v53, 0.7853982 }
 0x1a9   : > { %v1240_v15 = vsel %vm1233_vm8, %v1236_v25, %v1239_v38  ;;  %v2077_v31 = vsel %vm2070_vm9, %v2073_v35, %v2076_v36  ;;  %v1524_v47 = vshrl.u32 %v1506_v7, %v1522_v59  ;;  %v1527_v18 = vadd.s32 127, %v1526_v0 }
 0x1aa   : > { %v1241_v8 = vsel %vm1230_vm11, nan, %v1240_v15  ;;  %v2078_v55 = vsel %vm1230_vm11, nan, %v2077_v31  ;;  %v1401_v19 = vmul.u32 %v1394_v37, %v1385_v28  ;;  %v1658_v57 = vand.u32 2147483647, %v3676_v22 }
 0x1ab   : > { %1764 = vst [vmem:[%s3612_s30 + $0x20] sm:$0xff] %v1241_v8  ;;  %2596 = vst [vmem:[%s3612_s30 + $0x28] sm:$0xff] %v2078_v55  ;;  %v1670_v58 = vsel %vm1669_vm0, %v1668_v45, 0  ;;  %v1525_v26 = vor.u32 %v1524_v47, %v1523_v13  ;;  %v1528_v60 = vshll.u32 %v1527_v18, 23  ;;  %v1405_v27 = vsel %vm1403_vm15, %v1404_v29, %v3831_v21 }
 0x1ac   : > { %v1672_v51 = vand.u32 31, %v1670_v58  ;;  %v1539_v43 = vsel %vm3869_vm1, 0, %v1537_v32  ;;  %v1406_v56 = vadd.s32 %v1405_v27, %v1401_v19  ;;  %v1665_v4 = vand.u32 8388607, %v1658_v57 }
 0x1ad   : > { %v1529_v62 = vor.u32 4788187, %v1528_v60  ;;  %v1532_v2 = vcvt.s32.f32 %v1525_v26  ;;  %v1543_v5 = vadd.s32 3, %v1539_v43  ;;  %v1557_v46 = vand.u32 2139095040, %v3838_v40 }
 0x1ae   : > { %v1673_v41 = vsub.s32 32, %v1672_v51  ;;  %v1407_v7 = vadd.s32 536870912, %v1406_v56  ;;  %v1684_v30 = vshll.u32 %v3114_v52, %v1672_v51  ;;  %v3888_v10 = vshrl.u32 %v1670_v58, 5 }
 0x1af   : > { %v1530_v53 = vand.u32 2147483647, %v1529_v62  ;;  %v1675_v11 = vshll.u32 %v3111_v44, %v1672_v51  ;;  %v1678_v9 = vshll.u32 %v3112_v48, %v1672_v51  ;;  %v1681_v21 = vshll.u32 %v3113_v50, %v1672_v51 }
 0x1b0   : > { %v3879_v23 = vshrl.u32 %v1407_v7, 30  ;;  %v1676_v37 = vshrl.u32 %v3112_v48, %v1673_v41  ;;  %v1679_v6 = vshrl.u32 %v3113_v50, %v1673_v41  ;;  %v1685_v1 = vshrl.u32 %v3115_v54, %v1673_v41 }
 0x1b1   : > { %v1533_v39 = vmul.f32 %v1532_v2, %v1530_v53  ;;  %v1682_v20 = vshrl.u32 %v3114_v52, %v1673_v41  ;;  %v1688_v17 = vshrl.u32 %v3116_v61, %v1673_v41  ;;  %v3894_v38 = vand.u32 3, %v1539_v43 }
 0x1b2   : > { %v1409_v63 = vshll.u32 %v3879_v23, 30  ;;  %v1686_v3 = vor.u32 %v1685_v1, %v1684_v30  ;;  %v1677_v12 = vor.u32 %v1676_v37, %v1675_v11  ;;  %v1680_v45 = vor.u32 %v1679_v6, %v1678_v9 }
 0x1b3   : > { %v1534_v14 = vxor.u32 2147483648, %v1533_v39  ;;  %v1666_v35 = vor.u32 8388608, %v1665_v4  ;;  %v1683_v59 = vor.u32 %v1682_v20, %v1681_v21  ;;  %v1687_v32 = vshll.u32 %v3115_v54, %v1672_v51 }
 0x1b4   : > { %v3896_v36 = vsub.s32 %v1406_v56, %v1409_v63  ;;  %vm1693_vm3 = vcmp.lt.s32.totalorder %v3888_v10, 4  ;;  %v1558_v0 = vshrl.u32 %v1557_v46, 23  ;;  %vm1690_vm4 = vcmp.lt.s32.totalorder %v3888_v10, 1 }
 0x1b5   : > { %v1535_v25 = vsel %vm1452_vm6, %v1534_v14, %v1533_v39  ;;  %v1689_v28 = vor.u32 %v1688_v17, %v1687_v32  ;;  %v1699_v8 = vsel %vm1693_vm3, %v1686_v3, 920167782  ;;  %vm1692_vm2 = vcmp.lt.s32.totalorder %v3888_v10, 3 }
 0x1b6   : > { %v1538_v15 = vsel %vm3869_vm1, %v3407_v33, %v1535_v25  ;;  %v1412_v31 = vsub.s32 0, %v3896_v36  ;;  %v1698_v47 = vsel %vm1690_vm4, %v1677_v12, %v1680_v45  ;;  %v1544_v13 = vand.u32 3, %v1543_v5 }
 0x1b7   : > { %3031 = vcosq.f32 %v1538_v15  ;;  %v1700_v18 = vsel %vm1692_vm2, %v1683_v59, %v1699_v8  ;;  %v3915_v29 = vshll.u32 %v1666_v35, 8  ;;  %vm1348_vm5 = vcmp.lt.s32.totalorder %v3411_v34, 0 }
 0x1b8   : > { %3033 = vsinq.f32 %v1538_v15  ;;  %v2703_v55 = vmin.u32 %v1412_v31, %v3896_v36  ;;  %v1674_v19 = vshrl.u32 %v3111_v44, %v1673_v41  ;;  %vm1691_vm6 = vcmp.lt.s32.totalorder %v3888_v10, 2 }
 0x1b9   : > { %v1702_v58 = vsel %vm1690_vm4, %v1680_v45, %v1683_v59  ;;  %vm2383_vm7 = vcmp.eq.s32.totalorder %v3894_v38, 2  ;;  %v1695_v26 = vsel %vm1693_vm3, %v1683_v59, 2102212464  ;;  %v1701_v60 = vsel %vm1691_vm6, %v1698_v47, %v1700_v18 }
 0x1ba   : > { %v1414_v42 = vclz %v2703_v55  ;;  %v1703_v27 = vsel %vm1693_vm3, %v1689_v28, 1326507024  ;;  %v2710_v51 = vadd.s32 4294967169, %v1558_v0  ;;  %vm2380_vm8 = vcmp.eq.s32.totalorder %v3894_v38, 0 }
 0x1bb   : > { %v1704_v56 = vsel %vm1692_vm2, %v1686_v3, %v1703_v27  ;;  %v3933_v62 = vmul.u32.u64.low %v3915_v29, %v1701_v60  ;;  %v3934_v41 = vmul.u32.u64.high %v3915_v29, %v1701_v60, %v3933_v62  ;;  %vm1545_vm9 = vcmp.lt.s32.totalorder %v1544_v13, 2 }
 0x1bc   : > { %v2704_v43 = vadd.s32 4294967294, %v1414_v42  ;;  %vm2379_vm10 = vcmp.lt.s32.totalorder %v3894_v38, 2  ;;  %v1694_v7 = vsel %vm1690_vm4, %v1674_v19, %v1677_v12  ;;  %v1705_v53 = vsel %vm1691_vm6, %v1702_v58, %v1704_v56 }
 0x1bd   : > { %v1564_v2 = vadd.s32 1, %v2710_v51  ;;  %vm1542_vm11 = vweird.f32 %v3407_v33  ;;  %v1696_v5 = vsel %vm1692_vm2, %v1680_v45, %v1695_v26  ;;  %vm1546_vm13 = vcmp.eq.s32.totalorder %v1544_v13, 0 }
 0x1be   : > { %vm2705_vm12 = vcmp.lt.s32.totalorder %v2704_v43, 0  ;;  %v3946_v4 = vmul.u32.u64.low %v3915_v29, %v1705_v53  ;;  %v3947_v37 = vmul.u32.u64.high %v3915_v29, %v1705_v53, %v3946_v4  ;;  %v1432_v1 = vsub.s32 4, %v3879_v23 }
 0x1bf   : > { %v1417_v6 = vsel %vm2705_vm12, 0, %v2704_v43  ;;  %vm1565_vm14 = vcmp.gt.s32.totalorder %v1564_v2, 0  ;;  %vm1549_vm15 = vcmp.eq.s32.totalorder %v1544_v13, 2  ;;  %v1402_v39 = vadd.s32 %v3830_v24, %v3826_v49 }
 0x1c0   : > { %v1418_v20 = vsub.s32 32, %v1417_v6  ;;  %v1422_v30 = vsub.s32 4294967266, %v1417_v6  ;;  %v1697_v63 = vsel %vm1691_vm6, %v1694_v7, %v1696_v5  ;;  %v1716_v11 = vadd.s32 1, %v3934_v41 }
 0x1c1   : > { %v3032_v46 = vpop.eup %3031  ;;  %v1554_v9 = vand.u32 2147483647, %v3838_v40  ;;  %v1566_v14 = vsel %vm1565_vm14, %v1564_v2, 0  ;;  %v1419_v17 = vshll.u32 %v3896_v36, %v1417_v6  ;;  %v1433_v49 = vsel %vm1348_vm5, %v1432_v1, %v3879_v23 }
 0x1c2   : > { %v3034_v21 = vpop.eup %3033  ;;  %v1550_v3 = vxor.u32 2147483648, %v3032_v46  ;;  %v1420_v12 = vshrl.u32 %v1402_v39, %v1418_v20  ;;  %v1423_v45 = vadd.s32 127, %v1422_v30  ;;  %vm1715_vm0 = vc.u32 %v3947_v37, %v3933_v62 }
 0x1c3   : > { %v1547_v25 = vxor.u32 2147483648, %v3034_v21  ;;  %v1568_v24 = vand.u32 31, %v1566_v14  ;;  %v1713_v23 = vmul.u32 %v3915_v29, %v1697_v63  ;;  %v1717_v31 = vsel %vm1715_vm0, %v1716_v11, %v3934_v41 }
 0x1c4   : > { %v1551_v10 = vsel %vm1549_vm15, %v1550_v3, %v3034_v21  ;;  %v2385_v35 = vsel %vm2383_vm7, %v1550_v3, %v3034_v21  ;;  %v1421_v59 = vor.u32 %v1420_v12, %v1419_v17  ;;  %v1424_v36 = vshll.u32 %v1423_v45, 23 }
 0x1c5   : > { %v1548_v32 = vsel %vm1546_vm13, %v3032_v46, %v1547_v25  ;;  %v2382_v15 = vsel %vm2380_vm8, %v3032_v46, %v1547_v25  ;;  %v1569_v55 = vsub.s32 32, %v1568_v24  ;;  %v1718_v42 = vadd.s32 %v1717_v31, %v1713_v23 }
 0x1c6   : > { %v1552_v0 = vsel %vm1545_vm9, %v1548_v32, %v1551_v10  ;;  %v2386_v28 = vsel %vm2379_vm10, %v2382_v15, %v2385_v35  ;;  %v1425_v8 = vor.u32 4788187, %v1424_v36  ;;  %vm3981_vm1 = vcmp.le.f32.partialorder %v1346_v16, 0.7853982 }
 0x1c7   : > { %v1553_v47 = vsel %vm1542_vm11, nan, %v1552_v0  ;;  %v2387_v18 = vsel %vm1542_vm11, nan, %v2386_v28  ;;  %v1428_v38 = vcvt.s32.f32 %v1421_v59  ;;  %v1435_v19 = vsel %vm3981_vm1, 0, %v1433_v49 }
 0x1c8   : > { %1767 = vst [vmem:[%s3612_s30 + $0x50] sm:$0xff] %v1553_v47  ;;  %2599 = vst [vmem:[%s3612_s30 + $0x58] sm:$0xff] %v2387_v18  ;;  %v1426_v13 = vand.u32 2147483647, %v1425_v8  ;;  %v1719_v58 = vadd.s32 536870912, %v1718_v42  ;;  %v1572_v60 = vshrl.u32 %v3112_v48, %v1569_v55  ;;  %v1581_v27 = vshrl.u32 %v3115_v54, %v1569_v55 }
 0x1c9   : > { %v1561_v33 = vand.u32 8388607, %v1554_v9  ;;  %v1571_v16 = vshll.u32 %v3111_v44, %v1568_v24  ;;  %v1575_v43 = vshrl.u32 %v3113_v50, %v1569_v55  ;;  %v1578_v56 = vshrl.u32 %v3114_v52, %v1569_v55 }
 0x1ca   : > { %v1429_v26 = vmul.f32 %v1428_v38, %v1426_v13  ;;  %v3991_v51 = vshrl.u32 %v1719_v58, 30  ;;  %v1580_v7 = vshll.u32 %v3114_v52, %v1568_v24  ;;  %v1583_v53 = vshll.u32 %v3115_v54, %v1568_v24 }
 0x1cb   : > { %v1584_v2 = vshrl.u32 %v3116_v61, %v1569_v55  ;;  %v1567_v4 = vshrl.u32 %v1566_v14, 5  ;;  %v1574_v6 = vshll.u32 %v3112_v48, %v1568_v24  ;;  %v1577_v1 = vshll.u32 %v3113_v50, %v1568_v24 }
 0x1cc   : > { %v1430_v41 = vxor.u32 2147483648, %v1429_v26  ;;  %v1721_v5 = vshll.u32 %v3991_v51, 30  ;;  %v1573_v20 = vor.u32 %v1572_v60, %v1571_v16  ;;  %v1582_v30 = vor.u32 %v1581_v27, %v1580_v7 }
 0x1cd   : > { %v1585_v46 = vor.u32 %v1584_v2, %v1583_v53  ;;  %v1576_v61 = vor.u32 %v1575_v43, %v1574_v6  ;;  %v1579_v63 = vor.u32 %v1578_v56, %v1577_v1  ;;  %v1439_v11 = vadd.s32 3, %v1435_v19 }
 0x1ce   : > { %v1431_v39 = vsel %vm1348_vm5, %v1430_v41, %v1429_v26  ;;  %v4007_v54 = vsub.s32 %v1718_v42, %v1721_v5  ;;  %v1562_v50 = vor.u32 8388608, %v1561_v33  ;;  %vm1589_vm3 = vcmp.lt.s32.totalorder %v1567_v4, 4 }
 0x1cf   : > { %v1434_v52 = vsel %vm3981_vm1, %v3411_v34, %v1431_v39  ;;  %v2275_v14 = vand.u32 3, %v1435_v19  ;;  %vm1586_vm4 = vcmp.lt.s32.totalorder %v1567_v4, 1  ;;  %v1595_v21 = vsel %vm1589_vm3, %v1582_v30, 920167782 }
 0x1d0   : > { %3035 = vcosq.f32 %v1434_v52  ;;  %v1724_v48 = vsub.s32 0, %v4007_v54  ;;  %v1599_v3 = vsel %vm1589_vm3, %v1585_v46, 1326507024  ;;  %vm1588_vm2 = vcmp.lt.s32.totalorder %v1567_v4, 3 }
 0x1d1   : > { %3037 = vsinq.f32 %v1434_v52  ;;  %v1594_v12 = vsel %vm1586_vm4, %v1573_v20, %v1576_v61  ;;  %v1598_v45 = vsel %vm1586_vm4, %v1576_v61, %v1579_v63  ;;  %v1440_v25 = vand.u32 3, %v1439_v11 }
 0x1d2   : > { %v2715_v17 = vmin.u32 %v1724_v48, %v4007_v54  ;;  %v1596_v49 = vsel %vm1588_vm2, %v1579_v63, %v1595_v21  ;;  %v1600_v24 = vsel %vm1588_vm2, %v1582_v30, %v1599_v3  ;;  %vm1587_vm5 = vcmp.lt.s32.totalorder %v1567_v4, 2 }
 0x1d3   : > { %v1591_v35 = vsel %vm1589_vm3, %v1579_v63, 2102212464  ;;  %v1602_v59 = vshll.u32 %v1562_v50, 8  ;;  %v1570_v36 = vshrl.u32 %v3111_v44, %v1569_v55  ;;  %v1597_v32 = vsel %vm1587_vm5, %v1594_v12, %v1596_v49 }
 0x1d4   : > { %v1726_v10 = vclz %v2715_v17  ;;  %v1601_v15 = vsel %vm1587_vm5, %v1598_v45, %v1600_v24  ;;  %vm1438_vm6 = vweird.f32 %v3411_v34  ;;  %vm2276_vm7 = vcmp.lt.s32.totalorder %v2275_v14, 2 }
 0x1d5   : > { %v4019_v31 = vmul.u32.u64.low %v1602_v59, %v1601_v15  ;;  %v4020_v0 = vmul.u32.u64.high %v1602_v59, %v1601_v15, %v4019_v31  ;;  %v1590_v28 = vsel %vm1586_vm4, %v1570_v36, %v1573_v20  ;;  %v1592_v8 = vsel %vm1588_vm2, %v1576_v61, %v1591_v35 }
 0x1d6   : > { %v2716_v23 = vadd.s32 4294967294, %v1726_v10  ;;  %v4024_v47 = vmul.u32.u64.low %v1602_v59, %v1597_v32  ;;  %v4025_v18 = vmul.u32.u64.high %v1602_v59, %v1597_v32, %v4024_v47  ;;  %vm1441_vm8 = vcmp.lt.s32.totalorder %v1440_v25, 2 }
 0x1d7   : > { %vm2277_vm9 = vcmp.eq.s32.totalorder %v2275_v14, 0  ;;  %vm2280_vm10 = vcmp.eq.s32.totalorder %v2275_v14, 2  ;;  %vm1442_vm12 = vcmp.eq.s32.totalorder %v1440_v25, 0  ;;  %vm1445_vm13 = vcmp.eq.s32.totalorder %v1440_v25, 2 }
 0x1d8   : > { %vm2717_vm11 = vcmp.lt.s32.totalorder %v2716_v23, 0  ;;  %v1714_v55 = vadd.s32 %v3933_v62, %v3947_v37  ;;  %v1593_v58 = vsel %vm1587_vm5, %v1590_v28, %v1592_v8  ;;  %vm1611_vm14 = vc.u32 %v4020_v0, %v4024_v47 }
 0x1d9   : > { %v1729_v42 = vsel %vm2717_vm11, 0, %v2716_v23  ;;  %v1612_v60 = vadd.s32 1, %v4025_v18  ;;  %v1609_v41 = vmul.u32 %v1602_v59, %v1593_v58  ;;  %v1744_v63 = vsub.s32 4, %v3991_v51 }
 0x1da   : > { %v3036_v44 = vpop.eup %3035  ;;  %v1730_v38 = vsub.s32 32, %v1729_v42  ;;  %v1734_v19 = vsub.s32 4294967266, %v1729_v42  ;;  %v1731_v33 = vshll.u32 %v4007_v54, %v1729_v42  ;;  %vm1660_vm15 = vcmp.lt.s32.totalorder %v3676_v22, 0 }
 0x1db   : > { %v3038_v29 = vpop.eup %3037  ;;  %v1446_v13 = vxor.u32 2147483648, %v3036_v44  ;;  %v1613_v7 = vsel %vm1611_vm14, %v1612_v60, %v4025_v18  ;;  %vm1659_vm0 = vcmp.le.f32.partialorder %v1658_v57, 0.7853982  ;;  %v1745_v14 = vsel %vm1660_vm15, %v1744_v63, %v3991_v51 }
 0x1dc   : > { %v1443_v26 = vxor.u32 2147483648, %v3038_v29  ;;  %v1732_v37 = vshrl.u32 %v1714_v55, %v1730_v38  ;;  %v1735_v16 = vadd.s32 127, %v1734_v19  ;;  %v1614_v39 = vadd.s32 %v1613_v7, %v1609_v41 }
 0x1dd   : > { %v1447_v27 = vsel %vm1445_vm13, %v1446_v13, %v3038_v29  ;;  %v2282_v62 = vsel %vm2280_vm10, %v1446_v13, %v3038_v29  ;;  %v1747_v17 = vsel %vm1659_vm0, 0, %v1745_v14  ;;  %v1610_v57 = vadd.s32 %v4024_v47, %v4020_v0 }
 0x1de   : > { %v1444_v43 = vsel %vm1442_vm12, %v3036_v44, %v1443_v26  ;;  %v2279_v56 = vsel %vm2277_vm9, %v3036_v44, %v1443_v26  ;;  %v1733_v5 = vor.u32 %v1732_v37, %v1731_v33  ;;  %v1736_v4 = vshll.u32 %v1735_v16, 23 }
 0x1df   : > { %v1448_v53 = vsel %vm1441_vm8, %v1444_v43, %v1447_v27  ;;  %v2283_v2 = vsel %vm2276_vm7, %v2279_v56, %v2282_v62  ;;  %v1615_v30 = vadd.s32 536870912, %v1614_v39  ;;  %v1751_v25 = vadd.s32 3, %v1747_v17 }
 0x1e0   : > { %v1449_v6 = vsel %vm1438_vm6, nan, %v1448_v53  ;;  %v2284_v1 = vsel %vm1438_vm6, nan, %v2283_v2  ;;  %v1737_v20 = vor.u32 4788187, %v1736_v4  ;;  %v1740_v52 = vcvt.s32.f32 %v1733_v5 }
 0x1e1   : > { %1766 = vst [vmem:[%s3612_s30 + $0x40] sm:$0xff] %v1449_v6  ;;  %2598 = vst [vmem:[%s3612_s30 + $0x48] sm:$0xff] %v2284_v1  ;;  %v1616_v54 = vshrl.u32 %v1615_v30, 30  ;;  %v2584_v24 = vand.u32 3, %v1747_v17  ;;  %v1752_v10 = vand.u32 3, %v1751_v25  ;;  %vm1750_vm8 = vweird.f32 %v3676_v22 }
 0x1e2   : > { %v1738_v46 = vand.u32 2147483647, %v1737_v20  ;;  %vm1556_vm9 = vcmp.lt.s32.totalorder %v3838_v40, 0  ;;  %vm1555_vm10 = vcmp.le.f32.partialorder %v1554_v9, 0.7853982 }
 0x1e3   : > { %v1617_v11 = vshll.u32 %v1616_v54, 30  ;;  %vm2586_vm3 = vcmp.eq.s32.totalorder %v2584_v24, 0  ;;  %vm1754_vm4 = vcmp.eq.s32.totalorder %v1752_v10, 0  ;;  %vm1757_vm2 = vcmp.eq.s32.totalorder %v1752_v10, 2 }
 0x1e4   : > { %v1741_v61 = vmul.f32 %v1740_v52, %v1738_v46  ;;  %vm2589_vm5 = vcmp.eq.s32.totalorder %v2584_v24, 2  ;;  %vm1753_vm6 = vcmp.lt.s32.totalorder %v1752_v10, 2  ;;  %vm2585_vm7 = vcmp.lt.s32.totalorder %v2584_v24, 2 }
 0x1e5   : > { %v1618_v50 = vsub.s32 %v1614_v39, %v1617_v11  ;;  %v1640_v27 = vsub.s32 4, %v1616_v54 }
 0x1e6   : > { %v1742_v48 = vxor.u32 2147483648, %v1741_v61 }
 0x1e7   : > { %v1620_v3 = vsub.s32 0, %v1618_v50  ;;  %v1641_v37 = vsel %vm1556_vm9, %v1640_v27, %v1616_v54 }
 0x1e8   : > { %v1743_v34 = vsel %vm1660_vm15, %v1742_v48, %v1741_v61  ;;  %v1643_v43 = vsel %vm1555_vm10, 0, %v1641_v37 }
 0x1e9   : > { %v1746_v21 = vsel %vm1659_vm0, %v3676_v22, %v1743_v34  ;;  %v2711_v12 = vmin.u32 %v1620_v3, %v1618_v50  ;;  %v1647_v56 = vadd.s32 3, %v1643_v43  ;;  %v2481_v7 = vand.u32 3, %v1643_v43 }
 0x1ea   : > { %3039 = vcosq.f32 %v1746_v21 }
 0x1eb   : > { %3041 = vsinq.f32 %v1746_v21  ;;  %v1622_v45 = vclz %v2711_v12  ;;  %v1648_v41 = vand.u32 3, %v1647_v56  ;;  %vm2486_vm12 = vcmp.eq.s32.totalorder %v2481_v7, 2 }
 0x1ec   : > { %vm2483_vm14 = vcmp.eq.s32.totalorder %v2481_v7, 0  ;;  %vm2482_vm0 = vcmp.lt.s32.totalorder %v2481_v7, 2 }
 0x1ed   : > { %v2712_v49 = vadd.s32 4294967294, %v1622_v45  ;;  %vm1653_vm11 = vcmp.eq.s32.totalorder %v1648_v41, 2  ;;  %vm1650_vm13 = vcmp.eq.s32.totalorder %v1648_v41, 0  ;;  %vm1649_vm15 = vcmp.lt.s32.totalorder %v1648_v41, 2 }
 0x1ef   : > { %vm2713_vm1 = vcmp.lt.s32.totalorder %v2712_v49, 0 }
 0x1f0   : > { %v1625_v35 = vsel %vm2713_vm1, 0, %v2712_v49  ;;  %vm1646_vm1 = vweird.f32 %v3838_v40 }
 0x1f1   : > { %v1626_v59 = vsub.s32 32, %v1625_v35  ;;  %v1630_v36 = vsub.s32 4294967266, %v1625_v35  ;;  %v1627_v23 = vshll.u32 %v1618_v50, %v1625_v35 }
 0x1f3   : > { %v1628_v31 = vshrl.u32 %v1610_v57, %v1626_v59  ;;  %v1631_v28 = vadd.s32 127, %v1630_v36 }
 0x1f4   : > { %v3040_v51 = vpop.eup %3039 }
 0x1f5   : > { %v3042_v32 = vpop.eup %3041  ;;  %v1758_v15 = vxor.u32 2147483648, %v3040_v51  ;;  %v1629_v55 = vor.u32 %v1628_v31, %v1627_v23  ;;  %v1632_v42 = vshll.u32 %v1631_v28, 23 }
 0x1f6   : > { %v1755_v8 = vxor.u32 2147483648, %v3042_v32 }
 0x1f7   : > { %v1759_v18 = vsel %vm1757_vm2, %v1758_v15, %v3042_v32  ;;  %v2591_v44 = vsel %vm2589_vm5, %v1758_v15, %v3042_v32  ;;  %v1633_v38 = vor.u32 4788187, %v1632_v42  ;;  %v1636_v33 = vcvt.s32.f32 %v1629_v55 }
 0x1f8   : > { %v1756_v0 = vsel %vm1754_vm4, %v3040_v51, %v1755_v8  ;;  %v2588_v47 = vsel %vm2586_vm3, %v3040_v51, %v1755_v8 }
 0x1f9   : > { %v1760_v29 = vsel %vm1753_vm6, %v1756_v0, %v1759_v18  ;;  %v2592_v13 = vsel %vm2585_vm7, %v2588_v47, %v2591_v44  ;;  %v1634_v26 = vand.u32 2147483647, %v1633_v38 }
 0x1fa   : > { %v1761_v19 = vsel %vm1750_vm8, nan, %v1760_v29  ;;  %v2593_v58 = vsel %vm1750_vm8, nan, %v2592_v13 }
 0x1fb   : > { %1769 = vst [vmem:[%s3612_s30 + $0x70] sm:$0xff] %v1761_v19  ;;  %2601 = vst [vmem:[%s3612_s30 + $0x78] sm:$0xff] %v2593_v58  ;;  %v1637_v60 = vmul.f32 %v1636_v33, %v1634_v26 }
 0x1fd   : > { %v1638_v62 = vxor.u32 2147483648, %v1637_v60 }
 0x1ff   : > { %v1639_v22 = vsel %vm1556_vm9, %v1638_v62, %v1637_v60 }
 0x200   : > { %v1642_v16 = vsel %vm1555_vm10, %v3838_v40, %v1639_v22 }
 0x201   : > { %3043 = vcosq.f32 %v1642_v16 }
 0x202   : > { %3045 = vsinq.f32 %v1642_v16 }
 0x20b   : > { %v3044_v53 = vpop.eup %3043 }
 0x20c   : > { %v3046_v2 = vpop.eup %3045  ;;  %v1654_v5 = vxor.u32 2147483648, %v3044_v53 }
 0x20d   : > { %v1651_v4 = vxor.u32 2147483648, %v3046_v2 }
 0x20e   : > { %v1655_v9 = vsel %vm1653_vm11, %v1654_v5, %v3046_v2  ;;  %v2488_v6 = vsel %vm2486_vm12, %v1654_v5, %v3046_v2 }
 0x20f   : > { %v1652_v1 = vsel %vm1650_vm13, %v3044_v53, %v1651_v4  ;;  %v2485_v39 = vsel %vm2483_vm14, %v3044_v53, %v1651_v4 }
 0x210   : > { %v1656_v20 = vsel %vm1649_vm15, %v1652_v1, %v1655_v9  ;;  %v2489_v30 = vsel %vm2482_vm0, %v2485_v39, %v2488_v6 }
 0x211   : > { %v1657_v46 = vsel %vm1646_vm1, nan, %v1656_v20  ;;  %v2490_v52 = vsel %vm1646_vm1, nan, %v2489_v30 }
 0x212   : > { %1768 = vst [vmem:[%s3612_s30 + $0x60] sm:$0xff] %v1657_v46  ;;  %2600 = vst [vmem:[%s3612_s30 + $0x68] sm:$0xff] %v2490_v52 }
 0x213   : > { %3060 = shalt.err (!%p3057_p3)
}
 0x214   : > { %s3061_s21 = scalar_lea.hbm %s4068_s7, 2048  ;;  %s3065_s24 = scalar_lea.hbm %s4120_s2, 4096 }
 0x215   : > { %p3062_p4 = scmp.ne.s32.totalorder %s4068_s7, %s3061_s21  ;;  %p3066_p9 = scmp.lt.u32.totalorder %s4068_s7, %s4120_s2 }
 0x216   : > { %p3067_p10 = scmp.lt.u32.totalorder %s3065_s24, %s3061_s21  ;;  %p3069_p12 = scmp.lt.u32.totalorder %s3061_s21, %s4068_s7 }
 0x217   : > { %p3063_p7 = pnand %p3062_p4, %p3173_p5 }
 0x218   : > { %p3068_p11 = por %p3067_p10, %p3066_p9 }
 0x219   : > { %p3064_p8 = pneg %p3063_p7 }
 0x21a   : > { %p3070_p13 = por %p3069_p12, %p3068_p11 }
 0x21c   : > { %p3071_p0 = pnand %p3070_p13, %p3064_p8 }
 0x21e   : > { %3074 = shalt.err (!%p3071_p0)
}
 0x21f   : > { %s3118_s27 = smov 256   ;;  %s3119_s28 = smov 16  }
 0x220   : > { %2968 = dma.vmem_to_hbm [thread:$0]  (%p3173_p5), %s4070_s4, 2048, %s4068_s7, %s4077_s8, %s3118_s27, %s3118_s27, %s3119_s28  }
 0x221 PF: > { %p2974_p1 = scmp.ge.s32.totalorder %s3109_s12, 2  ;;  %s2632_s29 = sand.u32 1, %s3097_s9  }
 0x222   : > { %s2633_s30 = scalar_lea.sflag [#allocation3], %s2632_s29 }
 0x223   : > { %p2971_p2 = pnand %p2974_p1, %p3177_p6 }
 0x225   : > { %3092 = dma.done.wait (!%p2971_p2), %s2633_s30, 2048  }
 0x226   : > { %3094 = vsyncadd (!%p2971_p2), %s2633_s30, 4294965248  ;;  %p12_p3 = scmp.ge.s32.totalorder %s3160_s15, 4   ;;  %s4135_s9 = smov %s3101_s10 }
 0x227   : > { %s4136_s10 = smov %s3105_s11  ;;  %s4137_s11 = smov %s3171_s18 }
 0x228   : > { %s4138_s12 = smov %s3160_s15  ;;  %14 = sbr.rel (!%p12_p3) target bundleno = 3 (0x3), region = 63 }
 0x22f   :  { %2638 = vsyncpa [#allocation3], 1 }
 0x230   :  { %2640 = vsyncpa [#allocation3 + $0x1], 1 }

</bundles_post_ra>
